<compile_context>
chip_gen: v5e
topology: v5e:2x2
jax: 0.10.0
libtpu: 0.0.40
codegen_flags: <defaults>
</compile_context>

<pallas_src>
import functools

import jax
import jax.numpy as jnp
from jax.experimental import pallas as pl
from jax.experimental.pallas import tpu as pltpu

D_MODEL = 32
NHEAD = 4
HEAD_DIM = D_MODEL // NHEAD
QKV_PAD = 128            # in_proj output padded 96 -> 128 (lane-dense)
DIM_FF = 2048            # PyTorch TransformerEncoderLayer default dim_feedforward
NUM_LAYERS = 2
M_HIDDEN = 32            # machine_selector hidden width
LN_EPS = 1e-5


# ---------------------------------------------------------------------------
# In-kernel helpers (traced inside the Pallas kernel body)
# ---------------------------------------------------------------------------
def _layernorm(x, w, b):
    mu = jnp.mean(x, axis=-1, keepdims=True)
    var = jnp.mean((x - mu) ** 2, axis=-1, keepdims=True)      # biased var (PyTorch LN)
    return (x - mu) * jax.lax.rsqrt(var + LN_EPS) * w + b


def _softmax_last(x):
    m = jnp.max(x, axis=-1, keepdims=True)
    e = jnp.exp(x - m)
    return e / jnp.sum(e, axis=-1, keepdims=True)


def _dot_t(a, b):
    # (P, D) x (Q, D) -> (P, Q), contraction on the last dim of both (MXU, trans_b).
    return jax.lax.dot_general(a, b, (((1,), (1,)), ((), ())),
                               preferred_element_type=jnp.float32)


# ---------------------------------------------------------------------------
# Fused kernel: grid axis = encoder layer; last step also does the job softmax,
# Gumbel-max sampling (noise supplied in the input slab), and the machine branch.
# ---------------------------------------------------------------------------
def policy_kernel(n_jobs, n_machines, rbase,
                  in_ref, small_ref, lvec_ref, l1b_ref,
                  ipw_ref, opw_ref, l1w_ref, l2w_ref,
                  job_probs_ref, machine_probs_ref,
                  x_ref, attn_ref):
    l = pl.program_id(0)

    # ---- embedding (only on the first grid step) --------------------------
    @pl.when(l == 0)
    def _embed():
        proc_col = in_ref[0:n_jobs, 0:1]                       # (J, 1)
        asg_col = in_ref[0:n_jobs, 1:2]                        # (J, 1)
        be = small_ref[0:1, 0:D_MODEL]
        we0 = small_ref[1:2, 0:D_MODEL]
        we1 = small_ref[2:3, 0:D_MODEL]
        x_ref[...] = proc_col * we0 + asg_col * we1 + be

    # ---- encoder layer `l` (post-norm, ReLU FF) ----------------------------
    x = x_ref[...]                                             # (J, D) f32
    ipw = ipw_ref[...]                                         # (D, 128): Q-scale folded
    opw = opw_ref[...]                                         # (D, D)
    ipb = lvec_ref[0:1, 0:QKV_PAD]
    opb = lvec_ref[1:2, 0:D_MODEL]
    n1w = lvec_ref[2:3, 0:D_MODEL]
    n1b = lvec_ref[3:4, 0:D_MODEL]
    n2w = lvec_ref[4:5, 0:D_MODEL]
    n2b = lvec_ref[5:6, 0:D_MODEL]
    l2b = lvec_ref[6:7, 0:D_MODEL]
    l1b = l1b_ref[...]                                         # (1, DIM_FF)

    qkv = jnp.dot(x, ipw, preferred_element_type=jnp.float32) + ipb       # (J, 128)
    for h in range(NHEAD):                                     # static unroll, 4 heads
        s0 = h * HEAD_DIM
        qh = qkv[:, s0:s0 + HEAD_DIM]                          # scale already folded in
        kh = qkv[:, D_MODEL + s0:D_MODEL + s0 + HEAD_DIM]
        vh = qkv[:, 2 * D_MODEL + s0:2 * D_MODEL + s0 + HEAD_DIM]
        p = _softmax_last(_dot_t(qh, kh))                      # (J, J)
        attn_ref[:, s0:s0 + HEAD_DIM] = jnp.dot(p, vh, preferred_element_type=jnp.float32)
    attn = jnp.dot(attn_ref[...], opw, preferred_element_type=jnp.float32) + opb
    x = _layernorm(x + attn, n1w, n1b)

    # feed-forward: bf16 weights, f32 accumulation / elementwise; l2w is lane-dense.
    h1 = jnp.dot(x.astype(jnp.bfloat16), l1w_ref[...],
                 preferred_element_type=jnp.float32) + l1b
    h1 = jnp.maximum(h1, 0.0)
    h2 = _dot_t(h1.astype(jnp.bfloat16), l2w_ref[...]) + l2b
    x = _layernorm(x + h2, n2w, n2b)
    x_ref[...] = x

    # ---- job softmax + in-kernel sample + machine branch (last step only) --
    @pl.when(l == NUM_LAYERS - 1)
    def _head_and_sample():
        asg_row = in_ref[rbase + 1:rbase + 2, 0:n_jobs]        # (1, J)
        jow = small_ref[3:4, 0:D_MODEL]                        # job_out.weight (row)
        job_b = small_ref[8:9, 0:n_jobs]                       # job_out.bias (broadcast row)
        scores = _dot_t(jow, x) + job_b                        # (1, J) lane-dense
        scores = jnp.where(asg_row > 0.5, -jnp.inf, scores)    # masked_fill
        job_probs_ref[...] = _softmax_last(scores)

        # categorical sample from softmax(scores) via Gumbel-max (noise from wrapper)
        gumbel = in_ref[rbase + 2:rbase + 3, 0:n_jobs]         # (1, J)
        z = scores + gumbel
        zmax = jnp.max(z, axis=-1, keepdims=True)
        lane = jax.lax.broadcasted_iota(jnp.int32, (1, n_jobs), 1).astype(jnp.float32)
        cand = jnp.where(z >= zmax, lane, jnp.float32(n_jobs))
        sel = jnp.min(cand, axis=-1, keepdims=True)            # first argmax index
        onehot = (lane == sel).astype(jnp.float32)
        proc_row = in_ref[rbase:rbase + 1, 0:n_jobs]
        sel_proc = jnp.sum(proc_row * onehot, axis=-1, keepdims=True)     # (1, 1)

        # machine_selector: Linear(2,32) -> ReLU -> Linear(32,1) -> softmax
        mt_col = in_ref[0:n_machines, 2:3]                     # (M, 1)
        mw1r0 = small_ref[4:5, 0:M_HIDDEN]
        mw1r1 = small_ref[5:6, 0:M_HIDDEN]
        mw2r = small_ref[6:7, 0:M_HIDDEN]
        mb1 = small_ref[7:8, 0:M_HIDDEN]
        mb2 = small_ref[9:10, 0:n_machines]
        mh = jnp.maximum(sel_proc * mw1r0 + mt_col * mw1r1 + mb1, 0.0)    # (M, 32)
        ms = _dot_t(mw2r, mh) + mb2                            # (1, M) lane-dense
        machine_probs_ref[...] = _softmax_last(ms)


# ---------------------------------------------------------------------------
# Parameters (deterministic synthetic init), packed into a few slabs.
# ---------------------------------------------------------------------------
def init_params(key):
    keys = iter(jax.random.split(key, 40))

    def nrm(shape, scale=0.1):
        return jax.random.normal(next(keys), shape, dtype=jnp.float32) * scale

    we = nrm((2, D_MODEL))          # job_embed.weight (transposed)
    be = nrm((D_MODEL,))            # job_embed.bias
    jow = nrm((D_MODEL,))           # job_out.weight (as row)
    job_b = nrm(())                 # job_out.bias
    mw1 = nrm((2, M_HIDDEN))        # machine_selector[0].weight (transposed)
    mb1 = nrm((M_HIDDEN,))
    mw2 = nrm((M_HIDDEN,))          # machine_selector[2].weight (as row)
    mb2 = nrm(())

    small = jnp.zeros((16, 128), jnp.float32)
    small = small.at[0, :D_MODEL].set(be)
    small = small.at[1, :D_MODEL].set(we[0])
    small = small.at[2, :D_MODEL].set(we[1])
    small = small.at[3, :D_MODEL].set(jow)
    small = small.at[4, :M_HIDDEN].set(mw1[0])
    small = small.at[5, :M_HIDDEN].set(mw1[1])
    small = small.at[6, :M_HIDDEN].set(mw2)
    small = small.at[7, :M_HIDDEN].set(mb1)
    small = small.at[8, :].set(job_b)     # scalar bias broadcast across the row
    small = small.at[9, :].set(mb2)

    attn_scale = 1.0 / (HEAD_DIM ** 0.5)

    ipw_l, opw_l, l1w_l, l2w_l, lvec_l, l1b_l = [], [], [], [], [], []
    for _ in range(NUM_LAYERS):
        ipw = nrm((D_MODEL, 3 * D_MODEL))       # self_attn.in_proj_weight (transposed)
        ipb = nrm((3 * D_MODEL,))
        opw = nrm((D_MODEL, D_MODEL))           # self_attn.out_proj.weight (transposed)
        opb = nrm((D_MODEL,))
        l1w = nrm((D_MODEL, DIM_FF), 0.05)      # linear1 (transposed)
        l1b = nrm((DIM_FF,))
        l2w = nrm((D_MODEL, DIM_FF), 0.05)      # linear2 (PyTorch-native, lane-dense)
        l2b = nrm((D_MODEL,))
        n1w = jnp.ones((D_MODEL,), jnp.float32)
        n1b = jnp.zeros((D_MODEL,), jnp.float32)
        n2w = jnp.ones((D_MODEL,), jnp.float32)
        n2b = jnp.zeros((D_MODEL,), jnp.float32)

        # fold 1/sqrt(head_dim) into the Q columns of in_proj (weight-side, zero cost)
        ipw = ipw.at[:, :D_MODEL].multiply(attn_scale)
        ipb = ipb.at[:D_MODEL].multiply(attn_scale)
        # zero-pad in_proj to 128 output lanes (unmasked DMA / lane-dense matmul)
        ipw_p = jnp.zeros((D_MODEL, QKV_PAD), jnp.float32).at[:, :3 * D_MODEL].set(ipw)

        lv = jnp.zeros((8, 128), jnp.float32)
        lv = lv.at[0, :3 * D_MODEL].set(ipb)
        lv = lv.at[1, :D_MODEL].set(opb)
        lv = lv.at[2, :D_MODEL].set(n1w)
        lv = lv.at[3, :D_MODEL].set(n1b)
        lv = lv.at[4, :D_MODEL].set(n2w)
        lv = lv.at[5, :D_MODEL].set(n2b)
        lv = lv.at[6, :D_MODEL].set(l2b)

        ipw_l.append(ipw_p)
        opw_l.append(opw)
        l1w_l.append(l1w.astype(jnp.bfloat16))
        l2w_l.append(l2w.astype(jnp.bfloat16))
        lvec_l.append(lv)
        l1b_l.append(l1b.reshape(1, DIM_FF))

    return {
        "small": small,                 # (16, 128)       f32
        "lvec": jnp.stack(lvec_l),      # (L, 8, 128)     f32
        "l1b": jnp.stack(l1b_l),        # (L, 1, 2048)    f32
        "ipw": jnp.stack(ipw_l),        # (L, 32, 128)    f32 (padded, Q-scale folded)
        "opw": jnp.stack(opw_l),        # (L, 32, 32)     f32
        "l1w": jnp.stack(l1w_l),        # (L, 32, 2048)   bf16
        "l2w": jnp.stack(l2w_l),        # (L, 32, 2048)   bf16 (lane-dense)
    }


# ---------------------------------------------------------------------------
# Forward: one fused pallas_call (everything on the hot path is in-kernel)
# ---------------------------------------------------------------------------
def transformer_policy_forward(params, proc_times, assigned, machine_times, sample_seed):
    n_jobs = proc_times.shape[0]
    n_machines = machine_times.shape[0]
    assert n_jobs <= 128 and n_machines <= 128    # single-vreg row assumptions
    rbase = ((max(n_jobs, n_machines) + 7) // 8) * 8

    proc_f = proc_times.astype(jnp.float32)
    asg_f = assigned.astype(jnp.float32)
    mt_f = machine_times.astype(jnp.float32)
    gumbel = jax.random.gumbel(jax.random.PRNGKey(sample_seed), (n_jobs,),
                               dtype=jnp.float32)

    # One coalesced runtime-input slab: columns for the embedding / machine branch,
    # rows (below rbase) for the lane-oriented head math + gumbel noise.
    slab = jnp.zeros((rbase + 8, 128), jnp.float32)
    slab = slab.at[0:n_jobs, 0].set(proc_f)
    slab = slab.at[0:n_jobs, 1].set(asg_f)
    slab = slab.at[0:n_machines, 2].set(mt_f)
    slab = slab.at[rbase, 0:n_jobs].set(proc_f)
    slab = slab.at[rbase + 1, 0:n_jobs].set(asg_f)
    slab = slab.at[rbase + 2, 0:n_jobs].set(gumbel)

    kernel = functools.partial(policy_kernel, n_jobs, n_machines, rbase)

    grid_spec = pltpu.PrefetchScalarGridSpec(
        num_scalar_prefetch=0,
        grid=(NUM_LAYERS,),
        in_specs=[
            pl.BlockSpec((rbase + 8, 128), lambda l: (0, 0)),              # runtime slab
            pl.BlockSpec((16, 128), lambda l: (0, 0)),                     # small-param slab
            pl.BlockSpec((None, 8, 128), lambda l: (l, 0, 0)),             # per-layer vectors
            pl.BlockSpec((None, 1, DIM_FF), lambda l: (l, 0, 0)),          # l1 bias
            pl.BlockSpec((None, D_MODEL, QKV_PAD), lambda l: (l, 0, 0)),   # in_proj W (padded)
            pl.BlockSpec((None, D_MODEL, D_MODEL), lambda l: (l, 0, 0)),   # out_proj W
            pl.BlockSpec((None, D_MODEL, DIM_FF), lambda l: (l, 0, 0)),    # l1 W (bf16)
            pl.BlockSpec((None, D_MODEL, DIM_FF), lambda l: (l, 0, 0)),    # l2 W (bf16, lane-dense)
        ],
        out_specs=(
            pl.BlockSpec((1, n_jobs), lambda l: (0, 0)),
            pl.BlockSpec((1, n_machines), lambda l: (0, 0)),
        ),
        scratch_shapes=[pltpu.VMEM((n_jobs, D_MODEL), jnp.float32),        # x carry
                        pltpu.VMEM((n_jobs, D_MODEL), jnp.float32)],       # head accum
    )

    flops_layer = (2 * n_jobs * D_MODEL * QKV_PAD
                   + NHEAD * (4 * n_jobs * n_jobs * HEAD_DIM)
                   + 2 * n_jobs * D_MODEL * D_MODEL
                   + 4 * n_jobs * D_MODEL * DIM_FF)
    bytes_accessed = int(slab.size * 4
                         + sum(int(v.size) * v.dtype.itemsize for v in params.values())
                         + 4 * (n_jobs + n_machines))
    cost = pl.CostEstimate(
        flops=NUM_LAYERS * flops_layer + 2 * n_jobs * D_MODEL + 2 * n_machines * M_HIDDEN,
        transcendentals=NUM_LAYERS * NHEAD * n_jobs * n_jobs + n_jobs + n_machines,
        bytes_accessed=bytes_accessed)

    job_p, machine_p = pl.pallas_call(
        kernel,
        out_shape=(jax.ShapeDtypeStruct((1, n_jobs), jnp.float32),
                   jax.ShapeDtypeStruct((1, n_machines), jnp.float32)),
        grid_spec=grid_spec,
        compiler_params=pltpu.CompilerParams(dimension_semantics=("arbitrary",)),
        cost_estimate=cost,
    )(slab, params["small"], params["lvec"], params["l1b"],
      params["ipw"], params["opw"], params["l1w"], params["l2w"])

    return job_p.reshape(-1), machine_p.reshape(-1)


# ---------------------------------------------------------------------------
if __name__ == "__main__":
    key = jax.random.PRNGKey(0)
    k_proc, k_asg, k_mach, k_param, _ = jax.random.split(key, 5)

    n_jobs, n_machines = 8, 4
    proc_times = jax.random.uniform(k_proc, (n_jobs,), minval=1.0, maxval=10.0)
    assigned = (jax.random.uniform(k_asg, (n_jobs,)) < 0.3).astype(jnp.float32)
    assigned = assigned.at[0].set(0.0)        # ensure at least one unassigned job
    machine_times = jax.random.uniform(k_mach, (n_machines,), minval=0.0, maxval=5.0)

    params = init_params(k_param)
    forward = jax.jit(transformer_policy_forward)

    job_probs, machine_probs = forward(params, proc_times, assigned, machine_times,
                                       jnp.int32(42))
    jax.block_until_ready((job_probs, machine_probs))

    assert job_probs.shape == (n_jobs,)
    assert machine_probs.shape == (n_machines,)
    assert bool(jnp.all(jnp.isfinite(job_probs)))
    assert bool(jnp.all(jnp.isfinite(machine_probs)))
    assert abs(float(jnp.sum(job_probs)) - 1.0) < 1e-4
    assert abs(float(jnp.sum(machine_probs)) - 1.0) < 1e-4
    # masked (assigned) jobs must have zero probability
    assert float(jnp.max(job_probs * assigned)) == 0.0

    print("KERNEL_OK")
</pallas_src>

<mosaic_0001>
module attributes {stable_mosaic.version = 11 : i64} {
  func.func @policy_kernel(%arg0: i32, %arg1: memref<16x128xf32, #tpu.memory_space<vmem>>, %arg2: memref<16x128xf32, #tpu.memory_space<vmem>>, %arg3: memref<1x8x128xf32, #tpu.memory_space<vmem>>, %arg4: memref<1x1x2048xf32, #tpu.memory_space<vmem>>, %arg5: memref<1x32x128xf32, #tpu.memory_space<vmem>>, %arg6: memref<1x32x32xf32, #tpu.memory_space<vmem>>, %arg7: memref<1x32x2048xbf16, #tpu.memory_space<vmem>>, %arg8: memref<1x32x2048xbf16, #tpu.memory_space<vmem>>, %arg9: memref<1x8xf32, #tpu.memory_space<vmem>>, %arg10: memref<1x4xf32, #tpu.memory_space<vmem>>, %arg11: memref<8x32xf32, #tpu.memory_space<vmem>>, %arg12: memref<8x32xf32, #tpu.memory_space<vmem>>) attributes {dimension_semantics = [#tpu.dimension_semantics<arbitrary>], iteration_bounds = array<i64: 2>, scalar_prefetch = 0 : i64, scratch_operands = 2 : i64, tpu.core_type = #tpu.core_type<tc>, window_params = [{pipeline_mode = #tpu.pipeline_mode<synchronous>, transform_indices = @transform_0, window_bounds = array<i64: 16, 128>}, {pipeline_mode = #tpu.pipeline_mode<synchronous>, transform_indices = @transform_1, window_bounds = array<i64: 16, 128>}, {transform_indices = @transform_2, window_bounds = array<i64: 1, 8, 128>}, {transform_indices = @transform_3, window_bounds = array<i64: 1, 1, 2048>}, {transform_indices = @transform_4, window_bounds = array<i64: 1, 32, 128>}, {transform_indices = @transform_5, window_bounds = array<i64: 1, 32, 32>}, {transform_indices = @transform_6, window_bounds = array<i64: 1, 32, 2048>}, {transform_indices = @transform_7, window_bounds = array<i64: 1, 32, 2048>}, {pipeline_mode = #tpu.pipeline_mode<synchronous>, transform_indices = @transform_8, window_bounds = array<i64: 1, 8>}, {pipeline_mode = #tpu.pipeline_mode<synchronous>, transform_indices = @transform_9, window_bounds = array<i64: 1, 4>}]} {
    %c0_i32 = arith.constant 0 : i32
    %0 = arith.cmpi eq, %arg0, %c0_i32 : i32
    %1 = arith.extui %0 : i1 to i32
    %c0_i32_0 = arith.constant 0 : i32
    %2 = arith.cmpi ne, %1, %c0_i32_0 : i32
    scf.if %2 {
      %c0_72 = arith.constant 0 : index
      %c0_73 = arith.constant 0 : index
      %155 = vector.load %arg1[%c0_72, %c0_73] : memref<16x128xf32, #tpu.memory_space<vmem>>, vector<8x1xf32>
      %c0_74 = arith.constant 0 : index
      %c1_75 = arith.constant 1 : index
      %156 = vector.load %arg1[%c0_74, %c1_75] : memref<16x128xf32, #tpu.memory_space<vmem>>, vector<8x1xf32>
      %c0_76 = arith.constant 0 : index
      %c0_77 = arith.constant 0 : index
      %157 = vector.load %arg2[%c0_76, %c0_77] : memref<16x128xf32, #tpu.memory_space<vmem>>, vector<1x32xf32>
      %c1_78 = arith.constant 1 : index
      %c0_79 = arith.constant 0 : index
      %158 = vector.load %arg2[%c1_78, %c0_79] : memref<16x128xf32, #tpu.memory_space<vmem>>, vector<1x32xf32>
      %c2_80 = arith.constant 2 : index
      %c0_81 = arith.constant 0 : index
      %159 = vector.load %arg2[%c2_80, %c0_81] : memref<16x128xf32, #tpu.memory_space<vmem>>, vector<1x32xf32>
      %160 = vector.broadcast %155 : vector<8x1xf32> to vector<8x32xf32>
      %161 = vector.broadcast %158 : vector<1x32xf32> to vector<8x32xf32>
      %162 = arith.mulf %160, %161 : vector<8x32xf32>
      %163 = vector.broadcast %156 : vector<8x1xf32> to vector<8x32xf32>
      %164 = vector.broadcast %159 : vector<1x32xf32> to vector<8x32xf32>
      %165 = arith.mulf %163, %164 : vector<8x32xf32>
      %166 = arith.addf %162, %165 : vector<8x32xf32>
      %167 = vector.broadcast %157 : vector<1x32xf32> to vector<8x32xf32>
      %168 = arith.addf %166, %167 : vector<8x32xf32>
      %c0_82 = arith.constant 0 : index
      %c0_83 = arith.constant 0 : index
      %169 = vector.load %arg11[%c0_82, %c0_83] : memref<8x32xf32, #tpu.memory_space<vmem>>, vector<8x32xf32>
      tpu.vector_store %arg11[%c0_82, %c0_83], %168 {strides = array<i32>} : memref<8x32xf32, #tpu.memory_space<vmem>>, vector<8x32xf32>,
    } else {
    }
    %c0 = arith.constant 0 : index
    %c0_1 = arith.constant 0 : index
    %3 = vector.load %arg11[%c0, %c0_1] : memref<8x32xf32, #tpu.memory_space<vmem>>, vector<8x32xf32>
    %c0_2 = arith.constant 0 : index
    %c0_3 = arith.constant 0 : index
    %c0_4 = arith.constant 0 : index
    %4 = vector.load %arg5[%c0_2, %c0_3, %c0_4] : memref<1x32x128xf32, #tpu.memory_space<vmem>>, vector<1x32x128xf32>
    %5 = vector.shape_cast %4 : vector<1x32x128xf32> to vector<32x128xf32>
    %c0_5 = arith.constant 0 : index
    %c0_6 = arith.constant 0 : index
    %c0_7 = arith.constant 0 : index
    %6 = vector.load %arg6[%c0_5, %c0_6, %c0_7] : memref<1x32x32xf32, #tpu.memory_space<vmem>>, vector<1x32x32xf32>
    %7 = vector.shape_cast %6 : vector<1x32x32xf32> to vector<32x32xf32>
    %c0_8 = arith.constant 0 : index
    %c0_9 = arith.constant 0 : index
    %c0_10 = arith.constant 0 : index
    %8 = vector.load %arg3[%c0_8, %c0_9, %c0_10] : memref<1x8x128xf32, #tpu.memory_space<vmem>>, vector<1x1x128xf32>
    %9 = vector.shape_cast %8 : vector<1x1x128xf32> to vector<1x128xf32>
    %c0_11 = arith.constant 0 : index
    %c1 = arith.constant 1 : index
    %c0_12 = arith.constant 0 : index
    %10 = vector.load %arg3[%c0_11, %c1, %c0_12] : memref<1x8x128xf32, #tpu.memory_space<vmem>>, vector<1x1x32xf32>
    %11 = vector.shape_cast %10 : vector<1x1x32xf32> to vector<1x32xf32>
    %c0_13 = arith.constant 0 : index
    %c2 = arith.constant 2 : index
    %c0_14 = arith.constant 0 : index
    %12 = vector.load %arg3[%c0_13, %c2, %c0_14] : memref<1x8x128xf32, #tpu.memory_space<vmem>>, vector<1x1x32xf32>
    %13 = vector.shape_cast %12 : vector<1x1x32xf32> to vector<1x32xf32>
    %c0_15 = arith.constant 0 : index
    %c3 = arith.constant 3 : index
    %c0_16 = arith.constant 0 : index
    %14 = vector.load %arg3[%c0_15, %c3, %c0_16] : memref<1x8x128xf32, #tpu.memory_space<vmem>>, vector<1x1x32xf32>
    %15 = vector.shape_cast %14 : vector<1x1x32xf32> to vector<1x32xf32>
    %c0_17 = arith.constant 0 : index
    %c4 = arith.constant 4 : index
    %c0_18 = arith.constant 0 : index
    %16 = vector.load %arg3[%c0_17, %c4, %c0_18] : memref<1x8x128xf32, #tpu.memory_space<vmem>>, vector<1x1x32xf32>
    %17 = vector.shape_cast %16 : vector<1x1x32xf32> to vector<1x32xf32>
    %c0_19 = arith.constant 0 : index
    %c5 = arith.constant 5 : index
    %c0_20 = arith.constant 0 : index
    %18 = vector.load %arg3[%c0_19, %c5, %c0_20] : memref<1x8x128xf32, #tpu.memory_space<vmem>>, vector<1x1x32xf32>
    %19 = vector.shape_cast %18 : vector<1x1x32xf32> to vector<1x32xf32>
    %c0_21 = arith.constant 0 : index
    %c6 = arith.constant 6 : index
    %c0_22 = arith.constant 0 : index
    %20 = vector.load %arg3[%c0_21, %c6, %c0_22] : memref<1x8x128xf32, #tpu.memory_space<vmem>>, vector<1x1x32xf32>
    %21 = vector.shape_cast %20 : vector<1x1x32xf32> to vector<1x32xf32>
    %c0_23 = arith.constant 0 : index
    %c0_24 = arith.constant 0 : index
    %c0_25 = arith.constant 0 : index
    %22 = vector.load %arg4[%c0_23, %c0_24, %c0_25] : memref<1x1x2048xf32, #tpu.memory_space<vmem>>, vector<1x1x2048xf32>
    %23 = vector.shape_cast %22 : vector<1x1x2048xf32> to vector<1x2048xf32>
    %cst = arith.constant dense<0.000000e+00> : vector<8x128xf32>
    %24 = tpu.matmul %3, %5, %cst {dimension_numbers = #tpu.dot_dimension_numbers<[1], [0], [0], [1], [0, 0, 1, 1], [], []>} : vector<8x32xf32>, vector<32x128xf32>, vector<8x128xf32> -> vector<8x128xf32>
    %25 = vector.broadcast %9 : vector<1x128xf32> to vector<8x128xf32>
    %26 = arith.addf %24, %25 : vector<8x128xf32>
    %27 = vector.extract_strided_slice %26 {offsets = [0, 0], sizes = [8, 8], strides = [1, 1]} : vector<8x128xf32> to vector<8x8xf32>
    %28 = vector.extract_strided_slice %26 {offsets = [0, 32], sizes = [8, 8], strides = [1, 1]} : vector<8x128xf32> to vector<8x8xf32>
    %29 = vector.extract_strided_slice %26 {offsets = [0, 64], sizes = [8, 8], strides = [1, 1]} : vector<8x128xf32> to vector<8x8xf32>
    %cst_26 = arith.constant dense<0.000000e+00> : vector<8x8xf32>
    %30 = tpu.matmul %27, %28, %cst_26 {dimension_numbers = #tpu.dot_dimension_numbers<[1], [1], [0], [0], [0, 0, 1, 0], [], []>} : vector<8x8xf32>, vector<8x8xf32>, vector<8x8xf32> -> vector<8x8xf32>
    %cst_27 = arith.constant dense<0xFF800000> : vector<8xf32>
    %31 = vector.multi_reduction <maximumf>, %30, %cst_27 [1] : vector<8x8xf32> to vector<8xf32>
    %32 = vector.shape_cast %31 : vector<8xf32> to vector<8x1xf32>
    %33 = vector.broadcast %32 : vector<8x1xf32> to vector<8x8xf32>
    %34 = arith.subf %30, %33 : vector<8x8xf32>
    %35 = math.exp %34 : vector<8x8xf32>
    %cst_28 = arith.constant dense<0.000000e+00> : vector<8xf32>
    %36 = vector.multi_reduction <add>, %35, %cst_28 [1] : vector<8x8xf32> to vector<8xf32>
    %37 = vector.shape_cast %36 : vector<8xf32> to vector<8x1xf32>
    %38 = vector.broadcast %37 : vector<8x1xf32> to vector<8x8xf32>
    %39 = arith.divf %35, %38 : vector<8x8xf32>
    %cst_29 = arith.constant dense<0.000000e+00> : vector<8x8xf32>
    %40 = tpu.matmul %39, %29, %cst_29 {dimension_numbers = #tpu.dot_dimension_numbers<[1], [0], [0], [1], [0, 0, 1, 1], [], []>} : vector<8x8xf32>, vector<8x8xf32>, vector<8x8xf32> -> vector<8x8xf32>
    %c0_30 = arith.constant 0 : index
    %c0_31 = arith.constant 0 : index
    %41 = vector.load %arg12[%c0_30, %c0_31] : memref<8x32xf32, #tpu.memory_space<vmem>>, vector<8x8xf32>
    tpu.vector_store %arg12[%c0_30, %c0_31], %40 {strides = array<i32>} : memref<8x32xf32, #tpu.memory_space<vmem>>, vector<8x8xf32>,
    %42 = vector.extract_strided_slice %26 {offsets = [0, 8], sizes = [8, 8], strides = [1, 1]} : vector<8x128xf32> to vector<8x8xf32>
    %43 = vector.extract_strided_slice %26 {offsets = [0, 40], sizes = [8, 8], strides = [1, 1]} : vector<8x128xf32> to vector<8x8xf32>
    %44 = vector.extract_strided_slice %26 {offsets = [0, 72], sizes = [8, 8], strides = [1, 1]} : vector<8x128xf32> to vector<8x8xf32>
    %cst_32 = arith.constant dense<0.000000e+00> : vector<8x8xf32>
    %45 = tpu.matmul %42, %43, %cst_32 {dimension_numbers = #tpu.dot_dimension_numbers<[1], [1], [0], [0], [0, 0, 1, 0], [], []>} : vector<8x8xf32>, vector<8x8xf32>, vector<8x8xf32> -> vector<8x8xf32>
    %cst_33 = arith.constant dense<0xFF800000> : vector<8xf32>
    %46 = vector.multi_reduction <maximumf>, %45, %cst_33 [1] : vector<8x8xf32> to vector<8xf32>
    %47 = vector.shape_cast %46 : vector<8xf32> to vector<8x1xf32>
    %48 = vector.broadcast %47 : vector<8x1xf32> to vector<8x8xf32>
    %49 = arith.subf %45, %48 : vector<8x8xf32>
    %50 = math.exp %49 : vector<8x8xf32>
    %cst_34 = arith.constant dense<0.000000e+00> : vector<8xf32>
    %51 = vector.multi_reduction <add>, %50, %cst_34 [1] : vector<8x8xf32> to vector<8xf32>
    %52 = vector.shape_cast %51 : vector<8xf32> to vector<8x1xf32>
    %53 = vector.broadcast %52 : vector<8x1xf32> to vector<8x8xf32>
    %54 = arith.divf %50, %53 : vector<8x8xf32>
    %cst_35 = arith.constant dense<0.000000e+00> : vector<8x8xf32>
    %55 = tpu.matmul %54, %44, %cst_35 {dimension_numbers = #tpu.dot_dimension_numbers<[1], [0], [0], [1], [0, 0, 1, 1], [], []>} : vector<8x8xf32>, vector<8x8xf32>, vector<8x8xf32> -> vector<8x8xf32>
    %c0_36 = arith.constant 0 : index
    %c8 = arith.constant 8 : index
    %56 = vector.load %arg12[%c0_36, %c8] : memref<8x32xf32, #tpu.memory_space<vmem>>, vector<8x8xf32>
    tpu.vector_store %arg12[%c0_36, %c8], %55 {strides = array<i32>} : memref<8x32xf32, #tpu.memory_space<vmem>>, vector<8x8xf32>,
    %57 = vector.extract_strided_slice %26 {offsets = [0, 16], sizes = [8, 8], strides = [1, 1]} : vector<8x128xf32> to vector<8x8xf32>
    %58 = vector.extract_strided_slice %26 {offsets = [0, 48], sizes = [8, 8], strides = [1, 1]} : vector<8x128xf32> to vector<8x8xf32>
    %59 = vector.extract_strided_slice %26 {offsets = [0, 80], sizes = [8, 8], strides = [1, 1]} : vector<8x128xf32> to vector<8x8xf32>
    %cst_37 = arith.constant dense<0.000000e+00> : vector<8x8xf32>
    %60 = tpu.matmul %57, %58, %cst_37 {dimension_numbers = #tpu.dot_dimension_numbers<[1], [1], [0], [0], [0, 0, 1, 0], [], []>} : vector<8x8xf32>, vector<8x8xf32>, vector<8x8xf32> -> vector<8x8xf32>
    %cst_38 = arith.constant dense<0xFF800000> : vector<8xf32>
    %61 = vector.multi_reduction <maximumf>, %60, %cst_38 [1] : vector<8x8xf32> to vector<8xf32>
    %62 = vector.shape_cast %61 : vector<8xf32> to vector<8x1xf32>
    %63 = vector.broadcast %62 : vector<8x1xf32> to vector<8x8xf32>
    %64 = arith.subf %60, %63 : vector<8x8xf32>
    %65 = math.exp %64 : vector<8x8xf32>
    %cst_39 = arith.constant dense<0.000000e+00> : vector<8xf32>
    %66 = vector.multi_reduction <add>, %65, %cst_39 [1] : vector<8x8xf32> to vector<8xf32>
    %67 = vector.shape_cast %66 : vector<8xf32> to vector<8x1xf32>
    %68 = vector.broadcast %67 : vector<8x1xf32> to vector<8x8xf32>
    %69 = arith.divf %65, %68 : vector<8x8xf32>
    %cst_40 = arith.constant dense<0.000000e+00> : vector<8x8xf32>
    %70 = tpu.matmul %69, %59, %cst_40 {dimension_numbers = #tpu.dot_dimension_numbers<[1], [0], [0], [1], [0, 0, 1, 1], [], []>} : vector<8x8xf32>, vector<8x8xf32>, vector<8x8xf32> -> vector<8x8xf32>
    %c0_41 = arith.constant 0 : index
    %c16 = arith.constant 16 : index
    %71 = vector.load %arg12[%c0_41, %c16] : memref<8x32xf32, #tpu.memory_space<vmem>>, vector<8x8xf32>
    tpu.vector_store %arg12[%c0_41, %c16], %70 {strides = array<i32>} : memref<8x32xf32, #tpu.memory_space<vmem>>, vector<8x8xf32>,
    %72 = vector.extract_strided_slice %26 {offsets = [0, 24], sizes = [8, 8], strides = [1, 1]} : vector<8x128xf32> to vector<8x8xf32>
    %73 = vector.extract_strided_slice %26 {offsets = [0, 56], sizes = [8, 8], strides = [1, 1]} : vector<8x128xf32> to vector<8x8xf32>
    %74 = vector.extract_strided_slice %26 {offsets = [0, 88], sizes = [8, 8], strides = [1, 1]} : vector<8x128xf32> to vector<8x8xf32>
    %cst_42 = arith.constant dense<0.000000e+00> : vector<8x8xf32>
    %75 = tpu.matmul %72, %73, %cst_42 {dimension_numbers = #tpu.dot_dimension_numbers<[1], [1], [0], [0], [0, 0, 1, 0], [], []>} : vector<8x8xf32>, vector<8x8xf32>, vector<8x8xf32> -> vector<8x8xf32>
    %cst_43 = arith.constant dense<0xFF800000> : vector<8xf32>
    %76 = vector.multi_reduction <maximumf>, %75, %cst_43 [1] : vector<8x8xf32> to vector<8xf32>
    %77 = vector.shape_cast %76 : vector<8xf32> to vector<8x1xf32>
    %78 = vector.broadcast %77 : vector<8x1xf32> to vector<8x8xf32>
    %79 = arith.subf %75, %78 : vector<8x8xf32>
    %80 = math.exp %79 : vector<8x8xf32>
    %cst_44 = arith.constant dense<0.000000e+00> : vector<8xf32>
    %81 = vector.multi_reduction <add>, %80, %cst_44 [1] : vector<8x8xf32> to vector<8xf32>
    %82 = vector.shape_cast %81 : vector<8xf32> to vector<8x1xf32>
    %83 = vector.broadcast %82 : vector<8x1xf32> to vector<8x8xf32>
    %84 = arith.divf %80, %83 : vector<8x8xf32>
    %cst_45 = arith.constant dense<0.000000e+00> : vector<8x8xf32>
    %85 = tpu.matmul %84, %74, %cst_45 {dimension_numbers = #tpu.dot_dimension_numbers<[1], [0], [0], [1], [0, 0, 1, 1], [], []>} : vector<8x8xf32>, vector<8x8xf32>, vector<8x8xf32> -> vector<8x8xf32>
    %c0_46 = arith.constant 0 : index
    %c24 = arith.constant 24 : index
    %86 = vector.load %arg12[%c0_46, %c24] : memref<8x32xf32, #tpu.memory_space<vmem>>, vector<8x8xf32>
    tpu.vector_store %arg12[%c0_46, %c24], %85 {strides = array<i32>} : memref<8x32xf32, #tpu.memory_space<vmem>>, vector<8x8xf32>,
    %c0_47 = arith.constant 0 : index
    %c0_48 = arith.constant 0 : index
    %87 = vector.load %arg12[%c0_47, %c0_48] : memref<8x32xf32, #tpu.memory_space<vmem>>, vector<8x32xf32>
    %cst_49 = arith.constant dense<0.000000e+00> : vector<8x32xf32>
    %88 = tpu.matmul %87, %7, %cst_49 {dimension_numbers = #tpu.dot_dimension_numbers<[1], [0], [0], [1], [0, 0, 1, 1], [], []>} : vector<8x32xf32>, vector<32x32xf32>, vector<8x32xf32> -> vector<8x32xf32>
    %89 = vector.broadcast %11 : vector<1x32xf32> to vector<8x32xf32>
    %90 = arith.addf %88, %89 : vector<8x32xf32>
    %91 = arith.addf %3, %90 : vector<8x32xf32>
    %cst_50 = arith.constant dense<0.000000e+00> : vector<8xf32>
    %92 = vector.multi_reduction <add>, %91, %cst_50 [1] : vector<8x32xf32> to vector<8xf32>
    %93 = vector.shape_cast %92 : vector<8xf32> to vector<8x1xf32>
    %cst_51 = arith.constant 3.200000e+01 : f32
    %94 = vector.broadcast %cst_51 : f32 to vector<8x1xf32>
    %95 = arith.divf %93, %94 : vector<8x1xf32>
    %96 = vector.broadcast %95 : vector<8x1xf32> to vector<8x32xf32>
    %97 = arith.subf %91, %96 : vector<8x32xf32>
    %98 = arith.mulf %97, %97 : vector<8x32xf32>
    %cst_52 = arith.constant dense<0.000000e+00> : vector<8xf32>
    %99 = vector.multi_reduction <add>, %98, %cst_52 [1] : vector<8x32xf32> to vector<8xf32>
    %100 = vector.shape_cast %99 : vector<8xf32> to vector<8x1xf32>
    %cst_53 = arith.constant 3.200000e+01 : f32
    %101 = vector.broadcast %cst_53 : f32 to vector<8x1xf32>
    %102 = arith.divf %100, %101 : vector<8x1xf32>
    %103 = vector.broadcast %95 : vector<8x1xf32> to vector<8x32xf32>
    %104 = arith.subf %91, %103 : vector<8x32xf32>
    %cst_54 = arith.constant 9.99999974E-6 : f32
    %105 = vector.broadcast %cst_54 : f32 to vector<8x1xf32>
    %106 = arith.addf %102, %105 : vector<8x1xf32>
    %107 = math.rsqrt %106 : vector<8x1xf32>
    %108 = vector.broadcast %107 : vector<8x1xf32> to vector<8x32xf32>
    %109 = arith.mulf %104, %108 : vector<8x32xf32>
    %110 = vector.broadcast %13 : vector<1x32xf32> to vector<8x32xf32>
    %111 = arith.mulf %109, %110 : vector<8x32xf32>
    %112 = vector.broadcast %15 : vector<1x32xf32> to vector<8x32xf32>
    %113 = arith.addf %111, %112 : vector<8x32xf32>
    %114 = arith.truncf %113 : vector<8x32xf32> to vector<8x32xbf16>
    %c0_55 = arith.constant 0 : index
    %c0_56 = arith.constant 0 : index
    %c0_57 = arith.constant 0 : index
    %115 = vector.load %arg7[%c0_55, %c0_56, %c0_57] : memref<1x32x2048xbf16, #tpu.memory_space<vmem>>, vector<1x32x2048xbf16>
    %116 = vector.shape_cast %115 : vector<1x32x2048xbf16> to vector<32x2048xbf16>
    %cst_58 = arith.constant dense<0.000000e+00> : vector<8x2048xf32>
    %117 = tpu.matmul %114, %116, %cst_58 {dimension_numbers = #tpu.dot_dimension_numbers<[1], [0], [0], [1], [0, 0, 1, 1], [], []>} : vector<8x32xbf16>, vector<32x2048xbf16>, vector<8x2048xf32> -> vector<8x2048xf32>
    %118 = vector.broadcast %23 : vector<1x2048xf32> to vector<8x2048xf32>
    %119 = arith.addf %117, %118 : vector<8x2048xf32>
    %cst_59 = arith.constant 0.000000e+00 : f32
    %120 = vector.broadcast %cst_59 : f32 to vector<8x2048xf32>
    %121 = arith.maximumf %119, %120 : vector<8x2048xf32>
    %122 = arith.truncf %121 : vector<8x2048xf32> to vector<8x2048xbf16>
    %c0_60 = arith.constant 0 : index
    %c0_61 = arith.constant 0 : index
    %c0_62 = arith.constant 0 : index
    %123 = vector.load %arg8[%c0_60, %c0_61, %c0_62] : memref<1x32x2048xbf16, #tpu.memory_space<vmem>>, vector<1x32x2048xbf16>
    %124 = vector.shape_cast %123 : vector<1x32x2048xbf16> to vector<32x2048xbf16>
    %cst_63 = arith.constant dense<0.000000e+00> : vector<8x32xf32>
    %125 = tpu.matmul %122, %124, %cst_63 {dimension_numbers = #tpu.dot_dimension_numbers<[1], [1], [0], [0], [0, 0, 1, 0], [], []>} : vector<8x2048xbf16>, vector<32x2048xbf16>, vector<8x32xf32> -> vector<8x32xf32>
    %126 = vector.broadcast %21 : vector<1x32xf32> to vector<8x32xf32>
    %127 = arith.addf %125, %126 : vector<8x32xf32>
    %128 = arith.addf %113, %127 : vector<8x32xf32>
    %cst_64 = arith.constant dense<0.000000e+00> : vector<8xf32>
    %129 = vector.multi_reduction <add>, %128, %cst_64 [1] : vector<8x32xf32> to vector<8xf32>
    %130 = vector.shape_cast %129 : vector<8xf32> to vector<8x1xf32>
    %cst_65 = arith.constant 3.200000e+01 : f32
    %131 = vector.broadcast %cst_65 : f32 to vector<8x1xf32>
    %132 = arith.divf %130, %131 : vector<8x1xf32>
    %133 = vector.broadcast %132 : vector<8x1xf32> to vector<8x32xf32>
    %134 = arith.subf %128, %133 : vector<8x32xf32>
    %135 = arith.mulf %134, %134 : vector<8x32xf32>
    %cst_66 = arith.constant dense<0.000000e+00> : vector<8xf32>
    %136 = vector.multi_reduction <add>, %135, %cst_66 [1] : vector<8x32xf32> to vector<8xf32>
    %137 = vector.shape_cast %136 : vector<8xf32> to vector<8x1xf32>
    %cst_67 = arith.constant 3.200000e+01 : f32
    %138 = vector.broadcast %cst_67 : f32 to vector<8x1xf32>
    %139 = arith.divf %137, %138 : vector<8x1xf32>
    %140 = vector.broadcast %132 : vector<8x1xf32> to vector<8x32xf32>
    %141 = arith.subf %128, %140 : vector<8x32xf32>
    %cst_68 = arith.constant 9.99999974E-6 : f32
    %142 = vector.broadcast %cst_68 : f32 to vector<8x1xf32>
    %143 = arith.addf %139, %142 : vector<8x1xf32>
    %144 = math.rsqrt %143 : vector<8x1xf32>
    %145 = vector.broadcast %144 : vector<8x1xf32> to vector<8x32xf32>
    %146 = arith.mulf %141, %145 : vector<8x32xf32>
    %147 = vector.broadcast %17 : vector<1x32xf32> to vector<8x32xf32>
    %148 = arith.mulf %146, %147 : vector<8x32xf32>
    %149 = vector.broadcast %19 : vector<1x32xf32> to vector<8x32xf32>
    %150 = arith.addf %148, %149 : vector<8x32xf32>
    %c0_69 = arith.constant 0 : index
    %c0_70 = arith.constant 0 : index
    %151 = vector.load %arg11[%c0_69, %c0_70] : memref<8x32xf32, #tpu.memory_space<vmem>>, vector<8x32xf32>
    tpu.vector_store %arg11[%c0_69, %c0_70], %150 {strides = array<i32>} : memref<8x32xf32, #tpu.memory_space<vmem>>, vector<8x32xf32>,
    %c1_i32 = arith.constant 1 : i32
    %152 = arith.cmpi eq, %arg0, %c1_i32 : i32
    %153 = arith.extui %152 : i1 to i32
    %c0_i32_71 = arith.constant 0 : i32
    %154 = arith.cmpi ne, %153, %c0_i32_71 : i32
    scf.if %154 {
      %c9 = arith.constant 9 : index
      %c0_72 = arith.constant 0 : index
      %155 = vector.load %arg1[%c9, %c0_72] : memref<16x128xf32, #tpu.memory_space<vmem>>, vector<1x8xf32>
      %c3_73 = arith.constant 3 : index
      %c0_74 = arith.constant 0 : index
      %156 = vector.load %arg2[%c3_73, %c0_74] : memref<16x128xf32, #tpu.memory_space<vmem>>, vector<1x32xf32>
      %c8_75 = arith.constant 8 : index
      %c0_76 = arith.constant 0 : index
      %157 = vector.load %arg2[%c8_75, %c0_76] : memref<16x128xf32, #tpu.memory_space<vmem>>, vector<1x8xf32>
      %cst_77 = arith.constant dense<0.000000e+00> : vector<1x8xf32>
      %158 = tpu.matmul %156, %150, %cst_77 {dimension_numbers = #tpu.dot_dimension_numbers<[1], [1], [0], [0], [0, 0, 1, 0], [], []>} : vector<1x32xf32>, vector<8x32xf32>, vector<1x8xf32> -> vector<1x8xf32>
      %159 = arith.addf %158, %157 : vector<1x8xf32>
      %cst_78 = arith.constant 5.000000e-01 : f32
      %160 = vector.broadcast %cst_78 : f32 to vector<1x8xf32>
      %161 = arith.cmpf ogt, %155, %160 : vector<1x8xf32>
      %cst_79 = arith.constant 0xFF800000 : f32
      %162 = vector.broadcast %cst_79 : f32 to vector<1x8xf32>
      %163 = arith.select %161, %162, %159 : vector<1x8xi1>, vector<1x8xf32>
      %cst_80 = arith.constant dense<0xFF800000> : vector<1xf32>
      %164 = vector.multi_reduction <maximumf>, %163, %cst_80 [1] : vector<1x8xf32> to vector<1xf32>
      %165 = vector.shape_cast %164 : vector<1xf32> to vector<1x1xf32>
      %166 = vector.broadcast %165 : vector<1x1xf32> to vector<1x8xf32>
      %167 = arith.subf %163, %166 : vector<1x8xf32>
      %168 = math.exp %167 : vector<1x8xf32>
      %cst_81 = arith.constant dense<0.000000e+00> : vector<1xf32>
      %169 = vector.multi_reduction <add>, %168, %cst_81 [1] : vector<1x8xf32> to vector<1xf32>
      %170 = vector.shape_cast %169 : vector<1xf32> to vector<1x1xf32>
      %171 = vector.broadcast %170 : vector<1x1xf32> to vector<1x8xf32>
      %172 = arith.divf %168, %171 : vector<1x8xf32>
      %c0_82 = arith.constant 0 : index
      %c0_83 = arith.constant 0 : index
      %173 = vector.load %arg9[%c0_82, %c0_83] : memref<1x8xf32, #tpu.memory_space<vmem>>, vector<1x8xf32>
      tpu.vector_store %arg9[%c0_82, %c0_83], %172 {strides = array<i32>} : memref<1x8xf32, #tpu.memory_space<vmem>>, vector<1x8xf32>,
      %c10 = arith.constant 10 : index
      %c0_84 = arith.constant 0 : index
      %174 = vector.load %arg1[%c10, %c0_84] : memref<16x128xf32, #tpu.memory_space<vmem>>, vector<1x8xf32>
      %175 = arith.addf %163, %174 : vector<1x8xf32>
      %cst_85 = arith.constant dense<0xFF800000> : vector<1xf32>
      %176 = vector.multi_reduction <maximumf>, %175, %cst_85 [1] : vector<1x8xf32> to vector<1xf32>
      %177 = vector.shape_cast %176 : vector<1xf32> to vector<1x1xf32>
      %178 = tpu.iota {dimensions = array<i32: 1>} : vector<1x8xi32>
      %179 = arith.sitofp %178 : vector<1x8xi32> to vector<1x8xf32>
      %180 = vector.broadcast %177 : vector<1x1xf32> to vector<1x8xf32>
      %181 = arith.cmpf oge, %175, %180 : vector<1x8xf32>
      %cst_86 = arith.constant 8.000000e+00 : f32
      %182 = vector.broadcast %cst_86 : f32 to vector<1x8xf32>
      %183 = arith.select %181, %179, %182 : vector<1x8xi1>, vector<1x8xf32>
      %cst_87 = arith.constant dense<0x7F800000> : vector<1xf32>
      %184 = vector.multi_reduction <minimumf>, %183, %cst_87 [1] : vector<1x8xf32> to vector<1xf32>
      %185 = vector.shape_cast %184 : vector<1xf32> to vector<1x1xf32>
      %186 = vector.broadcast %185 : vector<1x1xf32> to vector<1x8xf32>
      %187 = arith.cmpf oeq, %179, %186 : vector<1x8xf32>
      %188 = arith.extui %187 : vector<1x8xi1> to vector<1x8xi32>
      %189 = arith.sitofp %188 : vector<1x8xi32> to vector<1x8xf32>
      %c8_88 = arith.constant 8 : index
      %c0_89 = arith.constant 0 : index
      %190 = vector.load %arg1[%c8_88, %c0_89] : memref<16x128xf32, #tpu.memory_space<vmem>>, vector<1x8xf32>
      %191 = arith.mulf %190, %189 : vector<1x8xf32>
      %cst_90 = arith.constant dense<0.000000e+00> : vector<1xf32>
      %192 = vector.multi_reduction <add>, %191, %cst_90 [1] : vector<1x8xf32> to vector<1xf32>
      %193 = vector.shape_cast %192 : vector<1xf32> to vector<1x1xf32>
      %c0_91 = arith.constant 0 : index
      %c2_92 = arith.constant 2 : index
      %194 = vector.load %arg1[%c0_91, %c2_92] : memref<16x128xf32, #tpu.memory_space<vmem>>, vector<4x1xf32>
      %c4_93 = arith.constant 4 : index
      %c0_94 = arith.constant 0 : index
      %195 = vector.load %arg2[%c4_93, %c0_94] : memref<16x128xf32, #tpu.memory_space<vmem>>, vector<1x32xf32>
      %c5_95 = arith.constant 5 : index
      %c0_96 = arith.constant 0 : index
      %196 = vector.load %arg2[%c5_95, %c0_96] : memref<16x128xf32, #tpu.memory_space<vmem>>, vector<1x32xf32>
      %c6_97 = arith.constant 6 : index
      %c0_98 = arith.constant 0 : index
      %197 = vector.load %arg2[%c6_97, %c0_98] : memref<16x128xf32, #tpu.memory_space<vmem>>, vector<1x32xf32>
      %c7 = arith.constant 7 : index
      %c0_99 = arith.constant 0 : index
      %198 = vector.load %arg2[%c7, %c0_99] : memref<16x128xf32, #tpu.memory_space<vmem>>, vector<1x32xf32>
      %c9_100 = arith.constant 9 : index
      %c0_101 = arith.constant 0 : index
      %199 = vector.load %arg2[%c9_100, %c0_101] : memref<16x128xf32, #tpu.memory_space<vmem>>, vector<1x4xf32>
      %200 = vector.broadcast %193 : vector<1x1xf32> to vector<1x32xf32>
      %201 = arith.mulf %200, %195 : vector<1x32xf32>
      %202 = vector.broadcast %194 : vector<4x1xf32> to vector<4x32xf32>
      %203 = vector.broadcast %196 : vector<1x32xf32> to vector<4x32xf32>
      %204 = arith.mulf %202, %203 : vector<4x32xf32>
      %205 = vector.broadcast %201 : vector<1x32xf32> to vector<4x32xf32>
      %206 = arith.addf %205, %204 : vector<4x32xf32>
      %207 = vector.broadcast %198 : vector<1x32xf32> to vector<4x32xf32>
      %208 = arith.addf %206, %207 : vector<4x32xf32>
      %cst_102 = arith.constant 0.000000e+00 : f32
      %209 = vector.broadcast %cst_102 : f32 to vector<4x32xf32>
      %210 = arith.maximumf %208, %209 : vector<4x32xf32>
      %cst_103 = arith.constant dense<0.000000e+00> : vector<1x4xf32>
      %211 = tpu.matmul %197, %210, %cst_103 {dimension_numbers = #tpu.dot_dimension_numbers<[1], [1], [0], [0], [0, 0, 1, 0], [], []>} : vector<1x32xf32>, vector<4x32xf32>, vector<1x4xf32> -> vector<1x4xf32>
      %212 = arith.addf %211, %199 : vector<1x4xf32>
      %cst_104 = arith.constant dense<0xFF800000> : vector<1xf32>
      %213 = vector.multi_reduction <maximumf>, %212, %cst_104 [1] : vector<1x4xf32> to vector<1xf32>
      %214 = vector.shape_cast %213 : vector<1xf32> to vector<1x1xf32>
      %215 = vector.broadcast %214 : vector<1x1xf32> to vector<1x4xf32>
      %216 = arith.subf %212, %215 : vector<1x4xf32>
      %217 = math.exp %216 : vector<1x4xf32>
      %cst_105 = arith.constant dense<0.000000e+00> : vector<1xf32>
      %218 = vector.multi_reduction <add>, %217, %cst_105 [1] : vector<1x4xf32> to vector<1xf32>
      %219 = vector.shape_cast %218 : vector<1xf32> to vector<1x1xf32>
      %220 = vector.broadcast %219 : vector<1x1xf32> to vector<1x4xf32>
      %221 = arith.divf %217, %220 : vector<1x4xf32>
      %c0_106 = arith.constant 0 : index
      %c0_107 = arith.constant 0 : index
      %222 = vector.load %arg10[%c0_106, %c0_107] : memref<1x4xf32, #tpu.memory_space<vmem>>, vector<1x4xf32>
      tpu.vector_store %arg10[%c0_106, %c0_107], %221 {strides = array<i32>} : memref<1x4xf32, #tpu.memory_space<vmem>>, vector<1x4xf32>,
    } else {
    }
    return
  }
  func.func @transform_0(%arg0: i32) -> (i32, i32) {
    %c0_i32 = arith.constant 0 : i32
    %c0_i32_0 = arith.constant 0 : i32
    %c0_i32_1 = arith.constant 0 : i32
    return %c0_i32, %c0_i32_0 : i32, i32
  }
  func.func @transform_1(%arg0: i32) -> (i32, i32) {
    %c0_i32 = arith.constant 0 : i32
    %c0_i32_0 = arith.constant 0 : i32
    %c0_i32_1 = arith.constant 0 : i32
    return %c0_i32, %c0_i32_0 : i32, i32
  }
  func.func @transform_2(%arg0: i32) -> (i32, i32, i32) {
    %c0_i32 = arith.constant 0 : i32
    %c0_i32_0 = arith.constant 0 : i32
    %c0_i32_1 = arith.constant 0 : i32
    return %arg0, %c0_i32, %c0_i32_0 : i32, i32, i32
  }
  func.func @transform_3(%arg0: i32) -> (i32, i32, i32) {
    %c0_i32 = arith.constant 0 : i32
    %c0_i32_0 = arith.constant 0 : i32
    %c0_i32_1 = arith.constant 0 : i32
    return %arg0, %c0_i32, %c0_i32_0 : i32, i32, i32
  }
  func.func @transform_4(%arg0: i32) -> (i32, i32, i32) {
    %c0_i32 = arith.constant 0 : i32
    %c0_i32_0 = arith.constant 0 : i32
    %c0_i32_1 = arith.constant 0 : i32
    return %arg0, %c0_i32, %c0_i32_0 : i32, i32, i32
  }
  func.func @transform_5(%arg0: i32) -> (i32, i32, i32) {
    %c0_i32 = arith.constant 0 : i32
    %c0_i32_0 = arith.constant 0 : i32
    %c0_i32_1 = arith.constant 0 : i32
    return %arg0, %c0_i32, %c0_i32_0 : i32, i32, i32
  }
  func.func @transform_6(%arg0: i32) -> (i32, i32, i32) {
    %c0_i32 = arith.constant 0 : i32
    %c0_i32_0 = arith.constant 0 : i32
    %c0_i32_1 = arith.constant 0 : i32
    return %arg0, %c0_i32, %c0_i32_0 : i32, i32, i32
  }
  func.func @transform_7(%arg0: i32) -> (i32, i32, i32) {
    %c0_i32 = arith.constant 0 : i32
    %c0_i32_0 = arith.constant 0 : i32
    %c0_i32_1 = arith.constant 0 : i32
    return %arg0, %c0_i32, %c0_i32_0 : i32, i32, i32
  }
  func.func @transform_8(%arg0: i32) -> (i32, i32) {
    %c0_i32 = arith.constant 0 : i32
    %c0_i32_0 = arith.constant 0 : i32
    %c0_i32_1 = arith.constant 0 : i32
    return %c0_i32, %c0_i32_0 : i32, i32
  }
  func.func @transform_9(%arg0: i32) -> (i32, i32) {
    %c0_i32 = arith.constant 0 : i32
    %c0_i32_0 = arith.constant 0 : i32
    %c0_i32_1 = arith.constant 0 : i32
    return %c0_i32, %c0_i32_0 : i32, i32
  }
}

</mosaic_0001>

<bundles_post_ra>
// kernel: transformer_policy_forward.1
= control target key start
LH: loop header
LB: loop body
LE: loop exit
PB: predicated region body
PF: predicated region fallthrough
CT: control target
= control target key end

     0   :  { %s3610_s0 = inlined_call_operand.vmem [shape: f32[16,128], index: 0, kind: input, shape index: {}]   ;;  %s3611_s1 = inlined_call_operand.hbm [shape: f32[16,128], index: 1, kind: input, shape index: {}]   ;;  %s3612_s2 = inlined_call_operand.hbm [shape: f32[2,8,128], index: 2, kind: input, shape index: {}]   ;;  %s3613_s3 = inlined_call_operand.hbm [shape: f32[2,1,2048], index: 3, kind: input, shape index: {}]   ;;  %s3614_s4 = inlined_call_operand.vmem [shape: f32[2,32,128], index: 4, kind: input, shape index: {}]   ;;  %s3615_s5 = inlined_call_operand.vmem [shape: f32[2,32,32], index: 5, kind: input, shape index: {}]   ;;  %s3616_s6 = inlined_call_operand.hbm [shape: bf16[2,32,2048], index: 6, kind: input, shape index: {}]   ;;  %s3617_s7 = inlined_call_operand.hbm [shape: bf16[2,32,2048], index: 7, kind: input, shape index: {}]   ;;  %s3618_s8 = inlined_call_operand.hbm [shape: f32[1,8], index: 8, kind: output, shape index: {0}]   ;;  %s3619_s9 = inlined_call_operand.hbm [shape: f32[1,4], index: 9, kind: output, shape index: {1}]  }
   0x1   :  { %3626 = sst [smem:[#allocation24_spill]] %s3611_s1 }
   0x2   :  { %3627 = sst [smem:[#allocation25_spill]] %s3612_s2 }
   0x3   :  { %3628 = sst [smem:[#allocation26_spill]] %s3616_s6 }
   0x4   :  { %3629 = sst [smem:[#allocation27_spill]] %s3619_s9 }
   0x5   :  { %15 = vsyncpa [#allocation5], 0 }
   0x6   :  { %16 = vsyncpa [#allocation8], 0 }
   0x7   :  { %18 = vsyncpa [#allocation8 + $0x1], 0 }
   0x8   :  { %19 = vsyncpa [#allocation11], 0 }
   0x9   :  { %21 = vsyncpa [#allocation11 + $0x1], 0 }
   0xa   :  { %22 = vsyncpa [#allocation6], 0 }
   0xb   :  { %23 = vsyncpa [#allocation15], 0  ;;  %s3078_s30 = smov 0   ;;  %s3080_s10 = smov 0  }
   0xc   :  { %s3082_s11 = smov 0   ;;  %s3084_s12 = smov 0  }
   0xd LB: > { %3630 = sst [smem:[#allocation21_spill]] %s2996_s11  ;;  %s3099_s13 = sadd.s32 1, %s3000_s12   ;;  %s3000_s12 = sphi %s3084_s12, %s3643_s12   ;;  %s2996_s11 = sphi %s3082_s11, %s3645_s11   ;;  %s2992_s10 = sphi %s3080_s10, %s3647_s10   ;;  %s2988_s30 = sphi %s3078_s30, %s3646_s30  }
   0xe   : > { %3631 = sst [smem:[#allocation22_spill]] %s3099_s13  ;;  %s78_s14 = sadd.s32 1, %s2996_s11 }
   0xf   : > { %s75_s15 = ssub.s32 %s3000_s12, %s3099_s13  ;;  %p85_p0 = scmp.ne.s32.totalorder %s2996_s11, %s2992_s10 }
  0x10   : > { %p76_p1 = scmp.eq.s32.totalorder %s75_s15, 0  ;;  %p86_p2 = scmp.eq.s32.totalorder %s3000_s12, 0 }
  0x11   : > { %p91_p3 = scmp.ne.s32.totalorder %s2992_s10, %s2988_s30  ;;  %p2634_p5 = scmp.lt.s32.totalorder %s3000_s12, 2 }
  0x12   : > { %s3110_s16 = scalar_select %p76_p1, %s2996_s11, %s78_s14  }
  0x13   : > { %p87_p4 = por %p86_p2, %p85_p0  ;;  %s3620_s17 = sand.u32 1, %s3000_s12  }
  0x14   : > { %3632 = sst [smem:[#allocation23_spill]] %s3110_s16  ;;  %s3115_s18 = sand.u32 1, %s2996_s11  }
  0x15   : > { %s2209_s19 = sshll.u32 %s3115_s18, 3  ;;  %s2210_s20 = sshll.u32 %s3000_s12, 3 }
  0x16   : > { %s3633_s2 = sld [smem:[#allocation25_spill]]  ;;  %s308_s24 = scalar_lea.vmem [#allocation7], %s2209_s19 }
  0x17   : > { %s316_s25 = sshll.u32 %s308_s24, 4  ;;  %p3122_p6 = pnand %p2634_p5, %p87_p4  ;;  %s317_s25 = int_to_ptr.vmem [resolvable:$true] %s316_s25 }
  0x18   : > { %s2213_s28 = sshll.u32 %s3115_s18, 8  ;;  %s3129_s29 = scalar_lea.sflag [#allocation8], %s3620_s17 }
  0x19   : > { %p2748_p8 = pneg %p3122_p6 }
  0x1c   : > { %s312_s23 = scalar_lea.hbm %s3633_s2, %s2210_s20  ;;  %s2751_s21 = scalar_lea.hbm %s3633_s2, 16 }
  0x1d   : > { %s314_s26 = sshll.u32 %s312_s23, 4  ;;  %s315_s26 = int_to_ptr.hbm [resolvable:$true] %s314_s26 }
  0x1e   : > { %s2744_s14 = sshra.s32 %s315_s26, 4  ;;  %s2745_s14 = int_to_ptr.hbm [resolvable:$true] %s2744_s14 }
  0x1f   : > { %s2746_s15 = scalar_lea.hbm %s2745_s14, 8  ;;  %p2752_p11 = scmp.lt.s32.totalorder %s2745_s14, %s3633_s2 }
  0x20   : > { %p2747_p7 = scmp.ne.s32.totalorder %s2745_s14, %s2746_s15  ;;  %p2753_p12 = scmp.lt.s32.totalorder %s2751_s21, %s2746_s15 }
  0x22   : > { %p2749_p9 = pnand %p2748_p8, %p2747_p7  ;;  %p2754_p13 = por %p2753_p12, %p2752_p11 }
  0x24   : > { %p2750_p10 = pneg %p2749_p9 }
  0x26   : > { %p2755_p0 = pnand %p2754_p13, %p2750_p10 }
  0x28   : > { %2758 = shalt.err (!%p2755_p0)
}
  0x29   : > { %2623 = dma.hbm_to_vmem [thread:$0]  (!%p3122_p6), %s315_s26, 128, %s317_s25, %s3129_s29  }
  0x2a   : > { %s384_s24 = scalar_lea.vmem [#allocation12], %s2213_s28  ;;  %s2528_s19 = sshll.u32 %s3000_s12, 8 }
  0x2b   : > { %s392_s17 = sshll.u32 %s384_s24, 4  ;;  %s3635_s6 = sld [smem:[#allocation26_spill]]  ;;  %s3145_s17 = int_to_ptr.vmem [resolvable:$true] %s392_s17 }
  0x2c   : > { %s362_s15 = scalar_lea.vmem [#allocation10], %s2213_s28  ;;  %s389_s11 = scalar_lea.hbm %s3617_s7, %s2528_s19 }
  0x2d   : > { %s370_s21 = sshll.u32 %s362_s15, 4  ;;  %s3636_s25 = sand.u32 1, %s3000_s12   ;;  %s371_s21 = int_to_ptr.vmem [resolvable:$true] %s370_s21 }
  0x2e   : > { %s3156_s26 = scalar_lea.sflag [#allocation11], %s3636_s25 }
  0x31   : > { %s367_s14 = scalar_lea.hbm %s3635_s6, %s2528_s19  ;;  %s2781_s20 = scalar_lea.hbm %s3635_s6, 512 }
  0x32   : > { %s368_s22 = sshll.u32 %s367_s14, 4  ;;  %s369_s22 = int_to_ptr.hbm [resolvable:$true] %s368_s22 }
  0x33   : > { %s2774_s24 = sshra.s32 %s369_s22, 4  ;;  %s2775_s24 = int_to_ptr.hbm [resolvable:$true] %s2774_s24 }
  0x34   : > { %s2776_s13 = scalar_lea.hbm %s2775_s24, 256  ;;  %p2782_p5 = scmp.lt.s32.totalorder %s2775_s24, %s3635_s6 }
  0x35   : > { %p2777_p1 = scmp.ne.s32.totalorder %s2775_s24, %s2776_s13  ;;  %p2783_p7 = scmp.lt.s32.totalorder %s2781_s20, %s2776_s13 }
  0x37   : > { %p2779_p2 = pnand %p2777_p1, %p2748_p8  ;;  %p2784_p9 = por %p2783_p7, %p2782_p5 }
  0x39   : > { %p2780_p4 = pneg %p2779_p2 }
  0x3b   : > { %p2785_p10 = pnand %p2784_p9, %p2780_p4 }
  0x3d   : > { %2788 = shalt.err (!%p2785_p10)
}
  0x3e   : > { %s3624_s2 = smov 1024   ;;  %s3625_s19 = smov 64  }
  0x3f   : > { %2629 = dma.hbm_to_vmem [thread:$0]  (!%p3122_p6), %s369_s22, 4096, %s371_s21, %s3156_s26, %s3624_s2, %s3624_s2, %s3625_s19  }
  0x40   : > { %s390_s23 = sshll.u32 %s389_s11, 4  ;;  %s3174_s13 = sadd.s32 4294967295, %s3000_s12   ;;  %s3176_s23 = int_to_ptr.hbm [resolvable:$true] %s390_s23 }
  0x41   : > { %p92_p11 = scmp.eq.s32.totalorder %s3174_s13, 0  ;;  %p2206_p12 = scmp.ge.s32.totalorder %s3000_s12, 1 }
  0x42   : > { %p274_p13 = scmp.lt.s32.totalorder %s3000_s12, 3  ;;  %p2207_p1 = scmp.ne.s32.totalorder %s3174_s13, 0 }
  0x43   : > { %p3186_p0 = por %p92_p11, %p91_p3  ;;  %s3639_s1 = sld [smem:[#allocation24_spill]] }
  0x44   : > { %p3191_p2 = pnand %p2206_p12, %p274_p13  ;;  %s3004_s16 = smov [#allocation4]  }
  0x45   : > { %s290_s30 = sshll.u32 %s3004_s16, 4  ;;  %s2211_s28 = sshll.u32 %s3115_s18, 4  ;;  %s291_s30 = int_to_ptr.vmem [resolvable:$true] %s290_s30 }
  0x46   : > { %p2616_p4 = pneg %p3191_p2  ;;  %s2212_s20 = sshll.u32 %s3000_s12, 4 }
  0x47   : > { %s3005_s14 = smov 128   ;;  %s3006_s15 = smov 8  }
  0x48   : > { %p2617_p3 = pnand %p2616_p4, %p92_p11  ;;  %s331_s21 = scalar_lea.hbm %s3613_s3, %s2212_s20 }
  0x49   : > { %s288_s24 = sshll.u32 %s3639_s1, 4  ;;  %s327_s22 = scalar_lea.vmem [#allocation9], %s2211_s28  ;;  %s289_s24 = int_to_ptr.hbm [resolvable:$true] %s288_s24 }
  0x4a   : > { %2619 = dma.hbm_to_vmem [thread:$0]  (!%p2617_p3), %s289_s24, 256, %s291_s30, [#allocation5], %s3005_s14, %s3005_s14, %s3006_s15  }
  0x4b   : > { %s335_s1 = sshll.u32 %s327_s22, 4  ;;  %s333_s6 = sshll.u32 %s331_s21, 4  ;;  %s336_s1 = int_to_ptr.vmem [resolvable:$true] %s335_s1  ;;  %s334_s6 = int_to_ptr.hbm [resolvable:$true] %s333_s6 }
  0x4c   : > { %s2834_s9 = sshra.s32 %s334_s6, 4  ;;  %s2841_s24 = scalar_lea.hbm %s3613_s3, 32  ;;  %s2835_s9 = int_to_ptr.hbm [resolvable:$true] %s2834_s9 }
  0x4d   : > { %s2836_s16 = scalar_lea.hbm %s2835_s9, 16  ;;  %p2842_p10 = scmp.lt.s32.totalorder %s2835_s9, %s3613_s3 }
  0x4e   : > { %p2837_p5 = scmp.ne.s32.totalorder %s2835_s9, %s2836_s16  ;;  %p2843_p12 = scmp.lt.s32.totalorder %s2841_s24, %s2836_s16 }
  0x50   : > { %p2839_p7 = pnand %p2837_p5, %p2748_p8  ;;  %p2844_p13 = por %p2843_p12, %p2842_p10 }
  0x52   : > { %p2840_p9 = pneg %p2839_p7 }
  0x54   : > { %p2845_p4 = pnand %p2844_p13, %p2840_p9 }
  0x56   : > { %2848 = shalt.err (!%p2845_p4)
}
  0x57   : > { %2626 = dma.hbm_to_vmem [thread:$0]  (!%p3122_p6), %s334_s6, 256, %s336_s1, %s3129_s29  }
  0x58   : > { %s2864_s19 = sshra.s32 %s3176_s23, 4  ;;  %s2871_s14 = scalar_lea.hbm %s3617_s7, 512  ;;  %s2865_s19 = int_to_ptr.hbm [resolvable:$true] %s2864_s19 }
  0x59   : > { %s2866_s28 = scalar_lea.hbm %s2865_s19, 256  ;;  %p2872_p9 = scmp.lt.s32.totalorder %s2865_s19, %s3617_s7 }
  0x5a   : > { %p2867_p3 = scmp.ne.s32.totalorder %s2865_s19, %s2866_s28  ;;  %p2873_p10 = scmp.lt.s32.totalorder %s2871_s14, %s2866_s28 }
  0x5c   : > { %p2869_p5 = pnand %p2867_p3, %p2748_p8  ;;  %p2874_p12 = por %p2873_p10, %p2872_p9 }
  0x5e   : > { %p2870_p7 = pneg %p2869_p5 }
  0x60   : > { %p2875_p13 = pnand %p2874_p12, %p2870_p7 }
  0x62   : > { %2878 = shalt.err (!%p2875_p13)
}
  0x63   : > { %s3640_s1 = smov 64   ;;  %s3641_s6 = smov 1024  }
  0x64   : > { %2632 = dma.hbm_to_vmem [thread:$0]  (!%p3122_p6), %s3176_s23, 4096, %s3145_s17, %s3156_s26, %s3641_s6, %s3641_s6, %s3640_s1  }
  0x65   : > { %404 = sbr.rel (%p3191_p2) target bundleno = 3114 (0xc2a), region = 52 }
  0x6a   : > { %2967 = dma.done.wait (%p92_p11), [#allocation5], 256  }
  0x6b   : > { %2969 = vsyncadd (%p92_p11), [#allocation5], 4294967040  ;;  %s411_s27 = sand.u32 1, %s3174_s13   ;;  %s413_s29 = sand.u32 1, %s2992_s10  }
  0x6c   : > { %s2221_s22 = sshll.u32 %s413_s29, 3  ;;  %s412_s16 = scalar_lea.sflag [#allocation8], %s411_s27 }
  0x6d   : > { %s3245_s12 = scalar_lea.vmem [#allocation7], %s2221_s22 }
  0x6e   : > { %2971 = dma.done.wait (%p3186_p0), %s412_s16, 384  }
  0x6f   : > { %2973 = vsyncadd (%p3186_p0), %s412_s16, 4294966912  ;;  %s2222_s17 = sshll.u32 %s413_s29, 4  ;;  %s2223_s26 = sshll.u32 %s413_s29, 8 }
  0x70   : > { %s3251_s23 = scalar_lea.vmem [#allocation9], %s2222_s17  ;;  %s432_s11 = scalar_lea.sflag [#allocation11], %s411_s27 }
  0x71   : > { %s3253_s18 = scalar_lea.vmem [#allocation10], %s2223_s26 }
  0x72   : > { %2975 = dma.done.wait (%p3186_p0), %s432_s11, 8192  }
  0x73   : > { %2977 = vsyncadd (%p3186_p0), %s432_s11, 4294959104  ;;  %p501_p6 = scmp.lt.s32.totalorder %s3174_s13, 1  ;;  %s3269_s15 = scalar_lea.vmem [#allocation12], %s2223_s26 }
  0x74   : > { %515 = sbr.rel (%p2207_p1) target bundleno = 254 (0xfe), region = 76 }
  0x75   : > { %s502_s24 = scalar_select %p501_p6, %s3174_s13, 1 }
  0x77   : > { %s2530_s30 = sshll.u32 %s502_s24, 5 }
  0x78   : > { %s505_s28 = scalar_lea.vmem %s3614_s4, %s2530_s30  ;;  %s3267_s14 = scalar_lea.vmem %s3615_s5, %s2530_s30 }
  0x79   : > { %v516_v0 = vld [vmem:[%s3610_s0] sm:$0xff]  ;;  %v3007_v1 = vmov 0   ;;  %v3008_v2 = vmov 1   ;;  %v2700_v4 = vld [vmem:[#allocation4 + $0x1] ss:$0 sm:$0xff]  ;;  %vm536_vm0 = vcmask 261120  }
  0x7a   : > { %2698 = vset.pattern.permute.xlu0 %v3007_v1  ;;  %v2701_v5 = vld [vmem:[#allocation4 + $0x2] ss:$0 sm:$0xff]  ;;  %v2702_v8 = vld [vmem:[#allocation4] ss:$0 sm:$0xff] }
  0x7b   : > { %522 = vperm.xlu0 %2698, %v516_v0  }
  0x83   : > { %2699 = vset.pattern.permute.xlu0 %v3008_v2 }
  0x84   : > { %528 = vperm.xlu0 %2699, %v516_v0  }
  0xed   : > { %v523_v3 = vpop.permute.xlu0 %522 }
  0xee   : > { %v526_v7 = vmul.f32 %v2700_v4, %v523_v3 }
  0xf6   : > { %v529_v6 = vpop.permute.xlu0 %528 }
  0xf7   : > { %v532_v9 = vmul.f32 %v2701_v5, %v529_v6 }
  0xf9   : > { %v533_v10 = vadd.f32 %v532_v9, %v526_v7 }
  0xfb   : > { %v535_v11 = vadd.f32 %v2702_v8, %v533_v10 }
  0xfd   : > { %537 = vst.msk [vmem:[#allocation2] sm:$0xff] %vm536_vm0, %v535_v11 }
  0xfe PF: > { %v542_v12 = vld [vmem:[%s505_s28 + $0x18] sm:$0xff]  ;;  %v541_v13 = vld [vmem:[%s505_s28 + $0x10] sm:$0xff]  ;;  %v540_v14 = vld [vmem:[%s505_s28 + $0x8] sm:$0xff]  ;;  %vm557_vm1 = vcmask 261120   ;;  %s3009_s1 = smov 72   ;;  %s3010_s6 = smov 120  }
  0xff   : > { %573 = vmatpush.msra.mxu0 %v542_v12  ;;  %v539_v15 = vld [vmem:[%s505_s28] sm:$0xff]  ;;  %s3011_s27 = smov 96   ;;  %s3012_s29 = smov 112   ;;  %vm584_vm2 = vcmask 64512  }
 0x100   : > { %v2703_v17 = vld [vmem:[%s3245_s12] ss:$0 sm:$0xff]  ;;  %s3013_s22 = smov 80   ;;  %s3014_s16 = smov 88  }
 0x101   : > { %574 = vmatpush.msra.mxu0 %v541_v13  ;;  %s3015_s17 = smov 104   ;;  %s3016_s26 = smov 56  }
 0x102   : > { %s3017_s11 = smov 40   ;;  %s3018_s24 = smov 64  }
 0x103   : > { %575 = vmatpush.msra.mxu0 %v540_v14  ;;  %s3019_s30 = smov 48   ;;  %s3020_s2 = smov 8  }
 0x104   : > { %v3276_v16 = vld [vmem:[#allocation2] sm:$0xff]  ;;  %s3021_s19 = smov 24   ;;  %s3022_s28 = smov 16  }
 0x105   : > { %576 = vmatpush.msra.mxu0 %v539_v15  ;;  %p2516_p8 = scmp.ne.s32.totalorder %s3174_s13, 1 }
 0x106   : > { %2230 = vmatmul.msk.f32.vlgmr.msra.gmra.mxu0 %vm557_vm1, %v3276_v16 }
 0x183   : > { %v578_v18 = vpop.f32.mrf.mxu0 }
 0x184   : > { %v3281_v19 = vadd.f32 %v2703_v17, %v578_v18 }
 0x186   : > { %830 = vrot.lane.b32.xlu2 %v3281_v19, %s3009_s1  ;;  %660 = vrot.lane.b32.xlu1 %v3281_v19, %s3010_s6 }
 0x187   : > { %582 = vrot.lane.b32.xlu0 %v3281_v19, %s3011_s27 }
 0x18e   : > { %744 = vrot.lane.b32.xlu2 %v3281_v19, %s3012_s29  ;;  %746 = vrot.lane.b32.xlu1 %v3281_v19, %s3013_s22 }
 0x18f   : > { %662 = vrot.lane.b32.xlu0 %v3281_v19, %s3014_s16 }
 0x197   : > { %828 = vrot.lane.b32.xlu0 %v3281_v19, %s3015_s17 }
 0x1e0   : > { %v831_v20 = vpop.permute.xlu2 %830 }
 0x1e1   : > { %2240 = vmatpush.xpose.msk.msrb.mxu0 %vm584_vm2, %v831_v20 }
 0x1e8   : > { %v745_v25 = vpop.permute.xlu2 %744 }
 0x1f8   : > { %v661_v21 = vpop.permute.xlu1 %660 }
 0x1f9   : > { %v583_v22 = vpop.permute.xlu0 %582 }
 0x1fa   : > { %2231 = vmatpush.xpose.msk.msra.mxu1 %vm584_vm2, %v583_v22 }
 0x1fd   : > { %2232 = vmatmul.msk.f32.vlgmr.msra.gmra.mxu1 %vm584_vm2, %v3281_v19 }
 0x200   : > { %v747_v23 = vpop.permute.xlu1 %746 }
 0x201   : > { %v663_v24 = vpop.permute.xlu0 %662  ;;  %2237 = vmatpush.xpose.msk.msrb.mxu1 %vm584_vm2, %v747_v23 }
 0x202   : > { %2234 = vmatpush.xpose.msk.msra.mxu3 %vm584_vm2, %v663_v24 }
 0x205   : > { %2235 = vmatmul.msk.f32.vlgmr.msra.gmra.mxu3 %vm584_vm2, %v661_v21  ;;  %2238 = vmatmul.msk.f32.vlgmr.msrb.gmra.mxu1 %vm584_vm2, %v745_v25 }
 0x209   : > { %v829_v26 = vpop.permute.xlu0 %828 }
 0x20a   : > { %2241 = vmatmul.msk.f32.vlgmr.msrb.gmra.mxu0 %vm584_vm2, %v829_v26 }
 0x27a   : > { %v606_v27 = vpop.f32.mrf.mxu1 }
 0x27b   : > { %v609_v28 = vsel %vm584_vm2, %v606_v27, -inf }
 0x27c   : > { %610 = vmax.xlane.f32.xlu1 %v609_v28 }
 0x282   : > { %v769_v29 = vpop.f32.mrf.mxu1 }
 0x283   : > { %v772_v30 = vsel %vm584_vm2, %v769_v29, -inf }
 0x284   : > { %773 = vmax.xlane.f32.xlu0 %v772_v30 }
 0x287   : > { %v853_v33 = vpop.f32.mrf.mxu0 }
 0x288   : > { %v685_v31 = vpop.f32.mrf.mxu3  ;;  %v856_v34 = vsel %vm584_vm2, %v853_v33, -inf }
 0x289   : > { %v688_v32 = vsel %vm584_vm2, %v685_v31, -inf }
 0x28a   : > { %689 = vmax.xlane.f32.xlu2 %v688_v32 }
 0x292   : > { %857 = vmax.xlane.f32.xlu2 %v856_v34 }
 0x298   : > { %712 = vrot.lane.b32.xlu0 %v3281_v19, %s3016_s26 }
 0x2ef   : > { %v611_v35 = vpop.xlane.xlu1 %610 }
 0x2f0   : > { %v612_v36 = vsub.f32 %v606_v27, %v611_v35 }
 0x2f2   : > { %v613_v37 = vmul.f32 1.442695, %v612_v36 }
 0x2f4   : > { %2710 = vpow2.f32 %v613_v37 }
 0x2f7   : > { %v774_v38 = vpop.xlane.xlu0 %773 }
 0x2f8   : > { %v775_v39 = vsub.f32 %v769_v29, %v774_v38 }
 0x2fa   : > { %v2711_v40 = vpop.eup %2710  ;;  %v776_v41 = vmul.f32 1.442695, %v775_v39 }
 0x2fb   : > { %v615_v42 = vsel %vm584_vm2, %v2711_v40, 0.0 }
 0x2fc   : > { %2712 = vpow2.f32 %v776_v41  ;;  %616 = vadd.xlane.f32.xlu1 %v615_v42 }
 0x2fd   : > { %v690_v43 = vpop.xlane.xlu2 %689 }
 0x2fe   : > { %v691_v44 = vsub.f32 %v685_v31, %v690_v43 }
 0x300   : > { %v692_v45 = vmul.f32 1.442695, %v691_v44 }
 0x302   : > { %v3305_v46 = vpop.eup %2712  ;;  %2714 = vpow2.f32 %v692_v45 }
 0x303   : > { %v778_v47 = vsel %vm584_vm2, %v3305_v46, 0.0 }
 0x304   : > { %779 = vadd.xlane.f32.xlu0 %v778_v47 }
 0x305   : > { %v858_v48 = vpop.xlane.xlu2 %857 }
 0x306   : > { %v859_v49 = vsub.f32 %v853_v33, %v858_v48 }
 0x308   : > { %v3309_v50 = vpop.eup %2714  ;;  %v860_v51 = vmul.f32 1.442695, %v859_v49  ;;  %v546_v49 = vld [vmem:[%s3267_s14 + $0x18] sm:$0xff] }
 0x309   : > { %v694_v52 = vsel %vm584_vm2, %v3309_v50, 0.0  ;;  %929 = vmatpush.msra.mxu1 %v546_v49  ;;  %v2542_v49 = vld [vmem:[%s3253_s18 + $0x4c] sm:$0xf0] }
 0x30a   : > { %2716 = vpow2.f32 %v860_v51  ;;  %695 = vadd.xlane.f32.xlu2 %v694_v52  ;;  %v713_v56 = vpop.permute.xlu0 %712  ;;  %v544_v51 = vld [vmem:[%s3267_s14 + $0x8] sm:$0xff]  ;;  %v543_v52 = vld [vmem:[%s3267_s14] sm:$0xff] }
 0x310   : > { %v3313_v53 = vpop.eup %2716 }
 0x311   : > { %v862_v54 = vsel %vm584_vm2, %v3313_v53, 0.0 }
 0x312   : > { %863 = vadd.xlane.f32.xlu1 %v862_v54 }
 0x318   : > { %880 = vrot.lane.b32.xlu0 %v3281_v19, %s3017_s11 }
 0x322   : > { %633 = vrot.lane.b32.xlu2 %v3281_v19, %s3018_s24 }
 0x32b   : > { %796 = vrot.lane.b32.xlu1 %v3281_v19, %s3019_s30 }
 0x36f   : > { %v617_v55 = vpop.xlane.xlu1 %616 }
 0x370   : > { %2718 = vrcp.f32 %v617_v55  ;;  %v629_v62 = vand.u32 2147483648, %v617_v55  ;;  %vm623_vm4 = vweird.f32 %v617_v55  ;;  %v627_v1 = vand.u32 2147483647, %v617_v55 }
 0x372   : > { %v630_v3 = vor.u32 1.1754944e-38, %v629_v62  ;;  %vm628_vm6 = vcmp.eq.f32.partialorder %v627_v1, 8.507059e+37 }
 0x376   : > { %v2719_v57 = vpop.eup %2718 }
 0x377   : > { %v619_v58 = vmul.f32 %v2719_v57, %v617_v55  ;;  %v3320_v60 = vpop.xlane.xlu0 %779  ;;  %vm624_vm3 = vweird.f32 %v2719_v57 }
 0x378   : > { %2720 = vrcp.f32 %v3320_v60  ;;  %vm625_vm5 = vmor %vm623_vm4, %vm624_vm3  ;;  %v792_v33 = vand.u32 2147483648, %v3320_v60  ;;  %vm786_vm15 = vweird.f32 %v3320_v60  ;;  %v790_v35 = vand.u32 2147483647, %v3320_v60 }
 0x379   : > { %v620_v59 = vsub.f32 1.0, %v619_v58 }
 0x37a   : > { %vm791_vm4 = vcmp.eq.f32.partialorder %v790_v35, 8.507059e+37  ;;  %v2558_v35 = vld [vmem:[%s3253_s18 + $0xcc] sm:$0xf0] }
 0x37b   : > { %v621_v61 = vmul.f32 %v2719_v57, %v620_v59 }
 0x37d   : > { %v696_v63 = vpop.xlane.xlu2 %695  ;;  %v622_v0 = vadd.f32 %v2719_v57, %v621_v61  ;;  %v3023_v61 = vmov 32.0  }
 0x37e   : > { %2722 = vrcp.f32 %v696_v63  ;;  %v2721_v5 = vpop.eup %2720  ;;  %v708_v13 = vand.u32 2147483648, %v696_v63  ;;  %v706_v15 = vand.u32 2147483647, %v696_v63  ;;  %vm702_vm8 = vweird.f32 %v696_v63 }
 0x37f   : > { %v626_v2 = vsel %vm625_vm5, %v2719_v57, %v622_v0  ;;  %v782_v11 = vmul.f32 %v2721_v5, %v3320_v60  ;;  %vm787_vm12 = vweird.f32 %v2721_v5  ;;  %vm742_vm5 = vcmask 130112  }
 0x380   : > { %v631_v4 = vsel %vm628_vm6, %v630_v3, %v626_v2  ;;  %v709_v21 = vor.u32 1.1754944e-38, %v708_v13  ;;  %vm707_vm10 = vcmp.eq.f32.partialorder %v706_v15, 8.507059e+37  ;;  %vm788_vm3 = vmor %vm786_vm15, %vm787_vm12  ;;  %vm910_vm6 = vcmask 261312   ;;  %v2318_v13 = vld [vmem:[%s3253_s18 + $0x88] sm:$0xf] }
 0x381   : > { %v632_v10 = vmul.f32 %v2711_v40, %v631_v4  ;;  %v783_v18 = vsub.f32 1.0, %v782_v11  ;;  %v793_v40 = vor.u32 1.1754944e-38, %v792_v33 }
 0x383   : > { %v784_v25 = vmul.f32 %v2721_v5, %v783_v18  ;;  %v2549_v18 = vld [vmem:[%s3253_s18 + $0x8c] sm:$0xf] }
 0x384   : > { %v2723_v6 = vpop.eup %2722 }
 0x385   : > { %v698_v7 = vmul.f32 %v2723_v6, %v696_v63  ;;  %v864_v8 = vpop.xlane.xlu1 %863  ;;  %v634_v9 = vpop.permute.xlu2 %633  ;;  %vm703_vm7 = vweird.f32 %v2723_v6  ;;  %v785_v31 = vadd.f32 %v2721_v5, %v784_v25  ;;  %v2248_v25 = vld [vmem:[%s3253_s18 + $0x40] sm:$0xf0] }
 0x386   : > { %2724 = vrcp.f32 %v864_v8  ;;  %654 = vmatpush.msra.mxu2 %v634_v9  ;;  %vm704_vm9 = vmor %vm702_vm8, %vm703_vm7  ;;  %v876_v28 = vand.u32 2147483648, %v864_v8  ;;  %v874_v30 = vand.u32 2147483647, %v864_v8  ;;  %vm870_vm13 = vweird.f32 %v864_v8  ;;  %v2556_v9 = vld [vmem:[%s3253_s18 + $0xbc] sm:$0xf0] }
 0x387   : > { %v699_v12 = vsub.f32 1.0, %v698_v7  ;;  %2233 = vmatmul.msk.f32.vlgmr.msra.gmra.mxu2 %vm584_vm2, %v632_v10  ;;  %v789_v39 = vsel %vm788_vm3, %v2721_v5, %v785_v31  ;;  %2726 = vrcp.f32 %v3023_v61  ;;  %v2548_v10 = vld [vmem:[%s3253_s18 + $0x84] sm:$0xf]  ;;  %v2256_v31 = vld [vmem:[%s3253_s18 + $0x48] sm:$0xf0] }
 0x388   : > { %733 = vmatpush.msrb.mxu2 %v713_v56  ;;  %v877_v34 = vor.u32 1.1754944e-38, %v876_v28  ;;  %vm875_vm0 = vcmp.eq.f32.partialorder %v874_v30, 8.507059e+37  ;;  %v794_v41 = vsel %vm791_vm4, %v793_v40, %v789_v39  ;;  %v2704_v56 = vld [vmem:[%s3245_s12 + $0x1] ss:$0 sm:$0xff]  ;;  %v2533_v30 = vld [vmem:[%s3253_s18 + $0xc] sm:$0xf] }
 0x389   : > { %v700_v14 = vmul.f32 %v2723_v6, %v699_v12  ;;  %v795_v43 = vmul.f32 %v3305_v46, %v794_v41  ;;  %v2312_v12 = vld [vmem:[%s3253_s18 + $0xc0] sm:$0xf0]  ;;  %v2328_v39 = vld [vmem:[%s3253_s18 + $0xd0] sm:$0xf0]  ;;  %v2334_v40 = vld [vmem:[%s3253_s18 + $0x98] sm:$0xf] }
 0x38a   : > { %v881_v17 = vpop.permute.xlu0 %880  ;;  %v2315_v15 = vor.u32 %v2548_v10, %v2312_v12  ;;  %v2559_v41 = vld [vmem:[%s3253_s18 + $0xd4] sm:$0xf0]  ;;  %v2552_v10 = vld [vmem:[%s3253_s18 + $0xa4] sm:$0xf]  ;;  %v2350_v12 = vld [vmem:[%s3253_s18 + $0xa8] sm:$0xf] }
 0x38b   : > { %v701_v19 = vadd.f32 %v2723_v6, %v700_v14  ;;  %901 = vmatpush.msra.mxu2 %v881_v17  ;;  %v2557_v14 = vld [vmem:[%s3253_s18 + $0xc4] sm:$0xf0] }
 0x38c   : > { %v2725_v20 = vpop.eup %2724  ;;  %v2319_v17 = vor.u32 %v2557_v14, %v2318_v13  ;;  %1220 = vmatpush.bf16.msra.mxu0 %v2315_v15  ;;  %v2561_v14 = vld [vmem:[%s3253_s18 + $0xe4] sm:$0xf0]  ;;  %v2553_v15 = vld [vmem:[%s3253_s18 + $0xac] sm:$0xf] }
 0x38d   : > { %v866_v22 = vmul.f32 %v2725_v20, %v864_v8  ;;  %v705_v23 = vsel %vm704_vm9, %v2723_v6, %v701_v19  ;;  %vm871_vm11 = vweird.f32 %v2725_v20  ;;  %v2727_v62 = vpop.eup %2726  ;;  %v2310_v8 = vld [vmem:[%s3253_s18 + $0x80] sm:$0xf]  ;;  %v2320_v19 = vld [vmem:[%s3253_s18 + $0xc8] sm:$0xf0] }
 0x38e   : > { %v710_v24 = vsel %vm707_vm10, %v709_v21, %v705_v23  ;;  %vm872_vm14 = vmor %vm870_vm13, %vm871_vm11  ;;  %v942_v63 = vmul.f32 32.0, %v2727_v62  ;;  %vm946_vm7 = vweird.f32 %v2727_v62  ;;  %v2311_v11 = vor.u32 %v2556_v9, %v2310_v8  ;;  %v2246_v21 = vld [vmem:[%s3253_s18] sm:$0xf]  ;;  %v2532_v23 = vld [vmem:[%s3253_s18 + $0x4] sm:$0xf] }
 0x38f   : > { %v867_v26 = vsub.f32 1.0, %v866_v22  ;;  %v711_v27 = vmul.f32 %v3309_v50, %v710_v24  ;;  %v545_v50 = vld [vmem:[%s3267_s14 + $0x10] sm:$0xff]  ;;  %v2251_v28 = vor.u32 %v2532_v23, %v2248_v25 }
 0x390   : > { %930 = vmatpush.msra.mxu1 %v545_v50  ;;  %v943_v0 = vsub.f32 1.0, %v942_v63  ;;  %v2540_v22 = vld [vmem:[%s3253_s18 + $0x3c] sm:$0xf0]  ;;  %v2534_v50 = vld [vmem:[%s3253_s18 + $0x14] sm:$0xf] }
 0x391   : > { %v868_v29 = vmul.f32 %v2725_v20, %v867_v26  ;;  %2236 = vmatmul.msk.f32.vlgmr.msrb.gmra.mxu2 %vm584_vm2, %v711_v27  ;;  %v2247_v24 = vor.u32 %v2540_v22, %v2246_v21  ;;  %v2254_v26 = vld [vmem:[%s3253_s18 + $0x8] sm:$0xf]  ;;  %1221 = vmatpush.bf16.msra.mxu0 %v2251_v28  ;;  %v2342_v8 = vld [vmem:[%s3253_s18 + $0xa0] sm:$0xf]  ;;  %v2351_v22 = vor.u32 %v2561_v14, %v2350_v12  ;;  %v2280_v25 = vld [vmem:[%s3253_s18 + $0x60] sm:$0xf0] }
 0x392   : > { %931 = vmatpush.msra.mxu1 %v544_v51  ;;  %v944_v1 = vmul.f32 %v2727_v62, %v943_v0  ;;  %1233 = vmatpush.bf16.msrb.mxu2 %v2319_v17  ;;  %v2541_v27 = vld [vmem:[%s3253_s18 + $0x44] sm:$0xf0]  ;;  %v2560_v9 = vld [vmem:[%s3253_s18 + $0xdc] sm:$0xf0]  ;;  %v2352_v17 = vld [vmem:[%s3253_s18 + $0xe8] sm:$0xf0] }
 0x393   : > { %v869_v32 = vadd.f32 %v2725_v20, %v868_v29  ;;  %v2255_v29 = vor.u32 %v2541_v27, %v2254_v26  ;;  %v2544_v21 = vld [vmem:[%s3253_s18 + $0x5c] sm:$0xf0]  ;;  %v2355_v23 = vor.u32 %v2553_v15, %v2352_v17  ;;  %v2286_v26 = vld [vmem:[%s3253_s18 + $0x28] sm:$0xf]  ;;  %v2537_v28 = vld [vmem:[%s3253_s18 + $0x2c] sm:$0xf] }
 0x394   : > { %932 = vmatpush.msra.mxu1 %v543_v52  ;;  %v945_v2 = vadd.f32 %v2727_v62, %v944_v1  ;;  %v2264_v52 = vld [vmem:[%s3253_s18 + $0x50] sm:$0xf0]  ;;  %v2545_v27 = vld [vmem:[%s3253_s18 + $0x64] sm:$0xf0]  ;;  %v2390_v14 = vld [vmem:[%s3269_s15] sm:$0xf] }
 0x395   : > { %v873_v36 = vsel %vm872_vm14, %v2725_v20, %v869_v32  ;;  %v2323_v20 = vor.u32 %v2549_v18, %v2320_v19  ;;  %v2259_v32 = vor.u32 %v2533_v30, %v2256_v31  ;;  %v2343_v18 = vor.u32 %v2560_v9, %v2342_v8  ;;  %v2392_v8 = vld [vmem:[%s3269_s15 + $0x40] sm:$0xf0]  ;;  %v2565_v9 = vld [vmem:[%s3269_s15 + $0xc] sm:$0xf]  ;;  %v2572_v15 = vld [vmem:[%s3269_s15 + $0x3c] sm:$0xf0] }
 0x396   : > { %v878_v37 = vsel %vm875_vm0, %v877_v34, %v873_v36  ;;  %v3343_v3 = vsel %vm946_vm7, %v2727_v62, %v945_v2  ;;  %1234 = vmatpush.bf16.msrb.mxu2 %v2255_v29  ;;  %v2326_v34 = vld [vmem:[%s3253_s18 + $0x90] sm:$0xf]  ;;  %v2550_v36 = vld [vmem:[%s3253_s18 + $0x94] sm:$0xf]  ;;  %v2288_v29 = vld [vmem:[%s3253_s18 + $0x68] sm:$0xf0] }
 0x397   : > { %v879_v38 = vmul.f32 %v3313_v53, %v878_v37  ;;  %1246 = vmatpush.bf16.msrb.mxu1 %v2323_v20  ;;  %v2705_v2 = vld [vmem:[%s3245_s12 + $0x2] ss:$0 sm:$0xff]  ;;  %v2278_v20 = vld [vmem:[%s3253_s18 + $0x20] sm:$0xf]  ;;  %v2398_v17 = vld [vmem:[%s3269_s15 + $0x8] sm:$0xf] }
 0x398   : > { %v2279_v30 = vor.u32 %v2544_v21, %v2278_v20  ;;  %v2582_v20 = vld [vmem:[%s3269_s15 + $0x94] sm:$0xf] }
 0x399   : > { %2242 = vmatmul.msk.f32.vlgmr.msra.gmra.mxu2 %vm584_vm2, %v879_v38  ;;  %v2327_v38 = vor.u32 %v2558_v35, %v2326_v34  ;;  %v2358_v34 = vld [vmem:[%s3253_s18 + $0xb0] sm:$0xf]  ;;  %v2472_v21 = vld [vmem:[%s3269_s15 + $0xd0] sm:$0xf0] }
 0x39a   : > { %v2562_v35 = vld [vmem:[%s3253_s18 + $0xec] sm:$0xf0] }
 0x39b   : > { %1247 = vmatpush.bf16.msrb.mxu1 %v2259_v32  ;;  %v2287_v32 = vor.u32 %v2545_v27, %v2286_v26  ;;  %v2470_v26 = vld [vmem:[%s3269_s15 + $0x90] sm:$0xf] }
 0x39c   : > { %v2590_v27 = vld [vmem:[%s3269_s15 + $0xcc] sm:$0xf0] }
 0x39d   : > { %v797_v42 = vpop.permute.xlu1 %796 }
 0x39e   : > { %817 = vmatpush.msrb.mxu3 %v797_v42  ;;  %v2331_v42 = vor.u32 %v2550_v36, %v2328_v39  ;;  %v2554_v36 = vld [vmem:[%s3253_s18 + $0xb4] sm:$0xf]  ;;  %v2563_v39 = vld [vmem:[%s3253_s18 + $0xf4] sm:$0xf0] }
 0x39f   : > { %2239 = vmatmul.msk.f32.vlgmr.msrb.gmra.mxu3 %vm584_vm2, %v795_v43  ;;  %v2335_v43 = vor.u32 %v2559_v41, %v2334_v40  ;;  %v2555_v40 = vld [vmem:[%s3253_s18 + $0xbc] sm:$0xf] }
 0x3a0   : > { %1207 = vmatpush.bf16.msra.mxu3 %v2311_v11  ;;  %1272 = vmatpush.bf16.msrb.mxu0 %v2331_v42  ;;  %v2344_v11 = vld [vmem:[%s3253_s18 + $0xe0] sm:$0xf0]  ;;  %v2368_v41 = vld [vmem:[%s3253_s18 + $0xf8] sm:$0xf0]  ;;  %v2359_v42 = vor.u32 %v2562_v35, %v2358_v34 }
 0x3a1   : > { %1285 = vmatpush.bf16.msra.mxu2 %v2335_v43  ;;  %v2347_v19 = vor.u32 %v2552_v10, %v2344_v11  ;;  %v2400_v11 = vld [vmem:[%s3269_s15 + $0x48] sm:$0xf0]  ;;  %v2567_v34 = vld [vmem:[%s3269_s15 + $0x1c] sm:$0xf] }
 0x3a2   : > { %v2403_v12 = vor.u32 %v2565_v9, %v2400_v11  ;;  %v2568_v11 = vld [vmem:[%s3269_s15 + $0x24] sm:$0xf] }
 0x3a4   : > { %1208 = vmatpush.bf16.msra.mxu3 %v2247_v24  ;;  %v2536_v24 = vld [vmem:[%s3253_s18 + $0x24] sm:$0xf] }
 0x3a5   : > { %v2283_v31 = vor.u32 %v2536_v24, %v2280_v25  ;;  %v2480_v24 = vld [vmem:[%s3269_s15 + $0xd8] sm:$0xf0] }
 0x3a8   : > { %1259 = vmatpush.bf16.msrb.mxu3 %v2327_v38  ;;  %v2366_v38 = vld [vmem:[%s3253_s18 + $0xb8] sm:$0xf] }
 0x40a   : > { %v656_v44 = vpop.f32.mrf.mxu2 }
 0x40b   : > { %659 = vst.msk [vmem:[#allocation3] sm:$0xff] %vm584_vm2, %v656_v44  ;;  %vm826_vm2 = vcmask 195712   ;;  %v2551_v44 = vld [vmem:[%s3253_s18 + $0x9c] sm:$0xf] }
 0x414   : > { %v735_v45 = vpop.f32.mrf.mxu2 }
 0x415   : > { %739 = vrot.lane.b32.xlu2 %v735_v45, %s3020_s2  ;;  %v2336_v45 = vld [vmem:[%s3253_s18 + $0xd8] sm:$0xf0] }
 0x41c   : > { %v903_v47 = vpop.f32.mrf.mxu2 }
 0x41d   : > { %907 = vrot.lane.b32.xlu0 %v903_v47, %s3021_s19  ;;  %v2262_v47 = vld [vmem:[%s3253_s18 + $0x10] sm:$0xf] }
 0x41e   : > { %v2263_v51 = vor.u32 %v2542_v49, %v2262_v47  ;;  %v2367_v47 = vor.u32 %v2563_v39, %v2366_v38  ;;  %v2296_v49 = vld [vmem:[%s3253_s18 + $0x70] sm:$0xf0]  ;;  %v2406_v38 = vld [vmem:[%s3269_s15 + $0x10] sm:$0xf] }
 0x41f   : > { %v2574_v39 = vld [vmem:[%s3269_s15 + $0x4c] sm:$0xf0] }
 0x420   : > { %1260 = vmatpush.bf16.msrb.mxu3 %v2263_v51  ;;  %v2547_v51 = vld [vmem:[%s3253_s18 + $0x74] sm:$0xf0] }
 0x422   : > { %v819_v48 = vpop.f32.mrf.mxu3 }
 0x423   : > { %823 = vrot.lane.b32.xlu1 %v819_v48, %s3022_s28 }
 0x46f   : > { %v740_v46 = vpop.permute.xlu2 %739 }
 0x470   : > { %743 = vst.msk [vmem:[#allocation3] sm:$0xff] %vm742_vm5, %v740_v46  ;;  %v2339_v46 = vor.u32 %v2551_v44, %v2336_v45  ;;  %v2294_v44 = vld [vmem:[%s3253_s18 + $0x30] sm:$0xf] }
 0x471   : > { %v2546_v45 = vld [vmem:[%s3253_s18 + $0x6c] sm:$0xf0] }
 0x48f   : > { %v908_v54 = vpop.permute.xlu0 %907 }
 0x495   : > { %v824_v53 = vpop.permute.xlu1 %823 }
 0x496   : > { %827 = vst.msk [vmem:[#allocation3] sm:$0xff] %vm826_vm2, %v824_v53  ;;  %v2270_v53 = vld [vmem:[%s3253_s18 + $0x18] sm:$0xf] }
 0x497   : > { %911 = vst.msk [vmem:[#allocation3] sm:$0xff] %vm910_vm6, %v908_v54  ;;  %v2543_v54 = vld [vmem:[%s3253_s18 + $0x54] sm:$0xf0] }
 0x49e   : > { %v912_v55 = vld [vmem:[#allocation3] sm:$0xff] }
 0x49f   : > { %2243 = vmatmul.msk.f32.vlgmr.msra.gmra.mxu1 %vm557_vm1, %v912_v55  ;;  %v2267_v55 = vor.u32 %v2534_v50, %v2264_v52  ;;  %v2302_v50 = vld [vmem:[%s3253_s18 + $0x38] sm:$0xf]  ;;  %v2539_v52 = vld [vmem:[%s3253_s18 + $0x3c] sm:$0xf] }
 0x4a0   : > { %1298 = vmatpush.bf16.msra.mxu1 %v2339_v46  ;;  %v2538_v46 = vld [vmem:[%s3253_s18 + $0x34] sm:$0xf] }
 0x4a1   : > { %1273 = vmatpush.bf16.msrb.mxu0 %v2267_v55  ;;  %v2299_v55 = vor.u32 %v2538_v46, %v2296_v49 }
 0x51c   : > { %v934_v57 = vpop.f32.mrf.mxu1 }
 0x51d   : > { %v935_v58 = vadd.f32 %v2704_v56, %v934_v57  ;;  %v2271_v56 = vor.u32 %v2543_v54, %v2270_v53  ;;  %v2535_v57 = vld [vmem:[%s3253_s18 + $0x1c] sm:$0xf]  ;;  %v2295_v54 = vor.u32 %v2546_v45, %v2294_v44  ;;  %v3490_v44 = vld [vmem:[%s3251_s23] sm:$0xff] }
 0x51e   : > { %v2304_v53 = vld [vmem:[%s3253_s18 + $0x78] sm:$0xf0]  ;;  %v1007_v45 = vperm.slane %v3490_v44, 1 }
 0x51f   : > { %v937_v59 = vadd.f32 %v935_v58, %v3276_v16  ;;  %v2272_v58 = vld [vmem:[%s3253_s18 + $0x58] sm:$0xf0]  ;;  %1286 = vmatpush.bf16.msra.mxu2 %v2271_v56  ;;  %v2303_v56 = vor.u32 %v2547_v51, %v2302_v50  ;;  %v2584_v50 = vld [vmem:[%s3269_s15 + $0xa4] sm:$0xf] }
 0x520   : > { %v2488_v51 = vld [vmem:[%s3269_s15 + $0xe0] sm:$0xf0] }
 0x521   : > { %v938_v60 = vsel %vm557_vm1, %v937_v59, 0.0 }
 0x522   : > { %939 = vadd.xlane.f32.xlu2 %v938_v60 }
 0x595   : > { %v940_v16 = vpop.xlane.xlu2 %939 }
 0x596   : > { %v948_v4 = vmul.f32 %v3343_v3, %v940_v16 }
 0x598   : > { %v3346_v5 = vsub.f32 %v937_v59, %v948_v4  ;;  %v2275_v59 = vor.u32 %v2535_v57, %v2272_v58  ;;  %v2706_v4 = vld [vmem:[%s3245_s12 + $0x3] ss:$0 sm:$0xff]  ;;  %v2307_v57 = vor.u32 %v2539_v52, %v2304_v53  ;;  %v2580_v58 = vld [vmem:[%s3269_s15 + $0x84] sm:$0xf]  ;;  %v2585_v53 = vld [vmem:[%s3269_s15 + $0xac] sm:$0xf] }
 0x59a   : > { %v950_v6 = vmul.f32 %v3346_v5, %v3346_v5  ;;  %1299 = vmatpush.bf16.msra.mxu1 %v2275_v59  ;;  %v2456_v59 = vld [vmem:[%s3269_s15 + $0xc0] sm:$0xf0] }
 0x59c   : > { %v951_v7 = vsel %vm557_vm1, %v950_v6, 0.0 }
 0x59d   : > { %952 = vadd.xlane.f32.xlu1 %v951_v7 }
 0x610   : > { %v953_v33 = vpop.xlane.xlu1 %952 }
 0x611   : > { %v954_v37 = vmul.f32 %v953_v33, %v3343_v3  ;;  %v2291_v33 = vor.u32 %v2537_v28, %v2288_v29  ;;  %v2478_v28 = vld [vmem:[%s3269_s15 + $0x98] sm:$0xf]  ;;  %v2471_v29 = vor.u32 %v2590_v27, %v2470_v26  ;;  %v2422_v27 = vld [vmem:[%s3269_s15 + $0x20] sm:$0xf] }
 0x613   : > { %v955_v48 = vadd.f32 1e-05, %v954_v37  ;;  %v2360_v37 = vld [vmem:[%s3253_s18 + $0xf0] sm:$0xf0] }
 0x614   : > { %v2363_v43 = vor.u32 %v2554_v36, %v2360_v37  ;;  %v2416_v36 = vld [vmem:[%s3269_s15 + $0x58] sm:$0xf0] }
 0x615   : > { %2728 = vrsqrt.f32 %v955_v48  ;;  %vm962_vm9 = vweird.f32 %v955_v48  ;;  %v2419_v37 = vor.u32 %v2567_v34, %v2416_v36  ;;  %v2586_v34 = vld [vmem:[%s3269_s15 + $0xb4] sm:$0xf] }
 0x61b   : > { %v2729_v60 = vpop.eup %2728 }
 0x61c   : > { %v957_v61 = vmul.f32 %v2729_v60, %v955_v48  ;;  %vm963_vm8 = vweird.f32 %v2729_v60  ;;  %v2371_v48 = vor.u32 %v2555_v40, %v2368_v41  ;;  %v2414_v40 = vld [vmem:[%s3269_s15 + $0x18] sm:$0xf]  ;;  %v2407_v41 = vor.u32 %v2574_v39, %v2406_v38  ;;  %v2587_v38 = vld [vmem:[%s3269_s15 + $0xbc] sm:$0xf] }
 0x61d   : > { %vm964_vm10 = vmor %vm962_vm9, %vm963_vm8  ;;  %v2512_v39 = vld [vmem:[%s3269_s15 + $0xf8] sm:$0xf0] }
 0x61e   : > { %v958_v62 = vmul.f32 %v2729_v60, %v957_v61  ;;  %v2464_v61 = vld [vmem:[%s3269_s15 + $0xc8] sm:$0xf0] }
 0x620   : > { %v959_v63 = vmul.f32 0.5, %v958_v62  ;;  %v2454_v62 = vld [vmem:[%s3269_s15 + $0x80] sm:$0xf] }
 0x622   : > { %v960_v0 = vsub.f32 1.5, %v959_v63  ;;  %v2588_v63 = vld [vmem:[%s3269_s15 + $0xbc] sm:$0xf0] }
 0x624   : > { %v961_v1 = vmul.f32 %v2729_v60, %v960_v0  ;;  %v2462_v0 = vld [vmem:[%s3269_s15 + $0x88] sm:$0xf] }
 0x626   : > { %v965_v16 = vsel %vm964_vm10, %v2729_v60, %v961_v1  ;;  %v2581_v60 = vld [vmem:[%s3269_s15 + $0x8c] sm:$0xf]  ;;  %v2589_v1 = vld [vmem:[%s3269_s15 + $0xc4] sm:$0xf0] }
 0x627   : > { %v966_v6 = vmul.f32 %v965_v16, %v3346_v5  ;;  %v2467_v16 = vor.u32 %v2581_v60, %v2464_v61 }
 0x629   : > { %v968_v7 = vmul.f32 %v2705_v2, %v966_v6  ;;  %v2459_v2 = vor.u32 %v2580_v58, %v2456_v59  ;;  %v2463_v6 = vor.u32 %v2589_v1, %v2462_v0  ;;  %v1008_v58 = vperm.slane %v3490_v44, 2 }
 0x62a   : > { %v2491_v59 = vor.u32 %v2584_v50, %v2488_v51 }
 0x62b   : > { %v3392_v13 = vadd.f32 %v2706_v4, %v968_v7  ;;  %v2455_v4 = vor.u32 %v2588_v63, %v2454_v62  ;;  %v2564_v7 = vld [vmem:[%s3269_s15 + $0x4] sm:$0xf] }
 0x62c   : > { %v2395_v10 = vor.u32 %v2564_v7, %v2392_v8  ;;  %v2494_v7 = vld [vmem:[%s3269_s15 + $0xa8] sm:$0xf] }
 0x62d   : > { %v3399_v5 = vpack.c.bf16 %v3392_v13, %v3392_v13  ;;  %v2593_v8 = vld [vmem:[%s3269_s15 + $0xe4] sm:$0xf0] }
 0x62f   : > { %2372 = vmatmul.msk.bf16.vlgmr.msra.gmra.mxu3 %vm557_vm1, %v3399_v5  ;;  %2373 = vmatmul.msk.bf16.vlgmr.msra.gmra.mxu0 %vm557_vm1, %v3399_v5 }
 0x630   : > { %2374 = vmatmul.msk.bf16.vlgmr.msrb.gmra.mxu2 %vm557_vm1, %v3399_v5  ;;  %2375 = vmatmul.msk.bf16.vlgmr.msrb.gmra.mxu1 %vm557_vm1, %v3399_v5 }
 0x631   : > { %1311 = vmatpush.bf16.msra.mxu3 %v2343_v18  ;;  %1324 = vmatpush.bf16.msra.mxu0 %v2347_v19  ;;  %v2391_v18 = vor.u32 %v2572_v15, %v2390_v14  ;;  %v2573_v19 = vld [vmem:[%s3269_s15 + $0x44] sm:$0xf0] }
 0x632   : > { %1337 = vmatpush.bf16.msrb.mxu2 %v2351_v22  ;;  %1350 = vmatpush.bf16.msrb.mxu1 %v2355_v23  ;;  %v2475_v22 = vor.u32 %v2582_v20, %v2472_v21  ;;  %v2583_v23 = vld [vmem:[%s3269_s15 + $0x9c] sm:$0xf] }
 0x633   : > { %v2483_v25 = vor.u32 %v2583_v23, %v2480_v24 }
 0x635   : > { %1312 = vmatpush.bf16.msra.mxu3 %v2279_v30  ;;  %1325 = vmatpush.bf16.msra.mxu0 %v2283_v31  ;;  %v2591_v30 = vld [vmem:[%s3269_s15 + $0xd4] sm:$0xf0] }
 0x636   : > { %1338 = vmatpush.bf16.msrb.mxu2 %v2287_v32  ;;  %1351 = vmatpush.bf16.msrb.mxu1 %v2291_v33  ;;  %v2479_v31 = vor.u32 %v2591_v30, %v2478_v28  ;;  %v2566_v32 = vld [vmem:[%s3269_s15 + $0x14] sm:$0xf]  ;;  %v2576_v28 = vld [vmem:[%s3269_s15 + $0x5c] sm:$0xf0]  ;;  %v2430_v30 = vld [vmem:[%s3269_s15 + $0x28] sm:$0xf] }
 0x637   : > { %v2408_v33 = vld [vmem:[%s3269_s15 + $0x50] sm:$0xf0] }
 0x638   : > { %v2411_v35 = vor.u32 %v2566_v32, %v2408_v33 }
 0x63f   : > { %2376 = vmatmul.msk.bf16.vlgmr.msrb.gmra.mxu3 %vm557_vm1, %v3399_v5  ;;  %2377 = vmatmul.msk.bf16.vlgmr.msrb.gmra.mxu0 %vm557_vm1, %v3399_v5 }
 0x640   : > { %2378 = vmatmul.msk.bf16.vlgmr.msra.gmra.mxu2 %vm557_vm1, %v3399_v5  ;;  %2379 = vmatmul.msk.bf16.vlgmr.msra.gmra.mxu1 %vm557_vm1, %v3399_v5 }
 0x641   : > { %1363 = vmatpush.bf16.msrb.mxu3 %v2359_v42  ;;  %1376 = vmatpush.bf16.msrb.mxu0 %v2363_v43  ;;  %v2575_v42 = vld [vmem:[%s3269_s15 + $0x54] sm:$0xf0] }
 0x642   : > { %1389 = vmatpush.bf16.msra.mxu2 %v2367_v47  ;;  %1402 = vmatpush.bf16.msra.mxu1 %v2371_v48  ;;  %v2415_v43 = vor.u32 %v2575_v42, %v2414_v40  ;;  %v1009_v47 = vperm.slane %v3490_v44, 3 }
 0x645   : > { %1364 = vmatpush.bf16.msrb.mxu3 %v2295_v54  ;;  %1377 = vmatpush.bf16.msrb.mxu0 %v2299_v55  ;;  %v2496_v54 = vld [vmem:[%s3269_s15 + $0xe8] sm:$0xf0] }
 0x646   : > { %1390 = vmatpush.bf16.msra.mxu2 %v2303_v56  ;;  %1403 = vmatpush.bf16.msra.mxu1 %v2307_v57  ;;  %v1006_v56 = vperm.slane %v3490_v44, 0  ;;  %v2499_v61 = vor.u32 %v2585_v53, %v2496_v54  ;;  %v2502_v53 = vld [vmem:[%s3269_s15 + $0xb0] sm:$0xf] }
 0x647   : > { %v2594_v54 = vld [vmem:[%s3269_s15 + $0xec] sm:$0xf0] }
 0x64f   : > { %2380 = vmatmul.msk.bf16.vlgmr.msra.gmra.mxu3 %vm557_vm1, %v3399_v5  ;;  %2381 = vmatmul.msk.bf16.vlgmr.msra.gmra.mxu0 %vm557_vm1, %v3399_v5 }
 0x650   : > { %2382 = vmatmul.msk.bf16.vlgmr.msrb.gmra.mxu2 %vm557_vm1, %v3399_v5  ;;  %2383 = vmatmul.msk.bf16.vlgmr.msrb.gmra.mxu1 %vm557_vm1, %v3399_v5 }
 0x651   : > { %1653 = vmatpush.bf16.xpose.msra.mxu0 %v2459_v2  ;;  %1679 = vmatpush.bf16.xpose.msrb.mxu1 %v2467_v16  ;;  %v2486_v2 = vld [vmem:[%s3269_s15 + $0xa0] sm:$0xf] }
 0x652   : > { %1640 = vmatpush.bf16.xpose.msra.mxu3 %v2455_v4  ;;  %1666 = vmatpush.bf16.xpose.msrb.mxu2 %v2463_v6  ;;  %v2592_v16 = vld [vmem:[%s3269_s15 + $0xdc] sm:$0xf0] }
 0x653   : > { %v2487_v15 = vor.u32 %v2592_v16, %v2486_v2  ;;  %v2448_v2 = vld [vmem:[%s3269_s15 + $0x78] sm:$0xf0] }
 0x659   : > { %1654 = vmatpush.bf16.xpose.msra.mxu0 %v2395_v10  ;;  %1680 = vmatpush.bf16.xpose.msrb.mxu1 %v2403_v12  ;;  %v2424_v12 = vld [vmem:[%s3269_s15 + $0x60] sm:$0xf0] }
 0x65a   : > { %1641 = vmatpush.bf16.xpose.msra.mxu3 %v2391_v18  ;;  %v2432_v18 = vld [vmem:[%s3269_s15 + $0x68] sm:$0xf0]  ;;  %v2427_v21 = vor.u32 %v2568_v11, %v2424_v12 }
 0x65f   : > { %2384 = vmatmul.msk.bf16.vlgmr.msrb.gmra.mxu3 %vm557_vm1, %v3399_v5  ;;  %2385 = vmatmul.msk.bf16.vlgmr.msrb.gmra.mxu0 %vm557_vm1, %v3399_v5 }
 0x660   : > { %2386 = vmatmul.msk.bf16.vlgmr.msra.gmra.mxu2 %vm557_vm1, %v3399_v5  ;;  %2387 = vmatmul.msk.bf16.vlgmr.msra.gmra.mxu1 %vm557_vm1, %v3399_v5  ;;  %v2399_v5 = vor.u32 %v2573_v19, %v2398_v17  ;;  %v2569_v17 = vld [vmem:[%s3269_s15 + $0x2c] sm:$0xf] }
 0x661   : > { %1705 = vmatpush.bf16.xpose.msrb.mxu0 %v2475_v22  ;;  %1731 = vmatpush.bf16.xpose.msra.mxu1 %v2483_v25  ;;  %v1011_v22 = vperm.slane %v3490_v44, 5  ;;  %v2435_v23 = vor.u32 %v2569_v17, %v2432_v18  ;;  %v1013_v25 = vperm.slane %v3490_v44, 7  ;;  %v2446_v18 = vld [vmem:[%s3269_s15 + $0x38] sm:$0xf] }
 0x662   : > { %1667 = vmatpush.bf16.xpose.msrb.mxu2 %v2399_v5  ;;  %1692 = vmatpush.bf16.xpose.msrb.mxu3 %v2471_v29  ;;  %v2495_v5 = vor.u32 %v2593_v8, %v2494_v7 }
 0x669   : > { %1706 = vmatpush.bf16.xpose.msrb.mxu0 %v2411_v35  ;;  %1732 = vmatpush.bf16.xpose.msra.mxu1 %v2419_v37  ;;  %v2504_v35 = vld [vmem:[%s3269_s15 + $0xf0] sm:$0xf0]  ;;  %v2423_v37 = vor.u32 %v2576_v28, %v2422_v27 }
 0x66a   : > { %1718 = vmatpush.bf16.xpose.msra.mxu2 %v2479_v31  ;;  %1693 = vmatpush.bf16.xpose.msrb.mxu3 %v2407_v41  ;;  %v2577_v31 = vld [vmem:[%s3269_s15 + $0x64] sm:$0xf0]  ;;  %v1010_v41 = vperm.slane %v3490_v44, 4 }
 0x66b   : > { %v2431_v42 = vor.u32 %v2577_v31, %v2430_v30 }
 0x672   : > { %1719 = vmatpush.bf16.xpose.msra.mxu2 %v2415_v43 }
 0x6ac   : > { %v1223_v48 = vpop.f32.mrf.mxu0 }
 0x6ad   : > { %v1224_v46 = vadd.f32 %v1223_v48, %v1007_v45  ;;  %v1249_v49 = vpop.f32.mrf.mxu1  ;;  %v1012_v45 = vperm.slane %v3490_v44, 6 }
 0x6ae   : > { %v1250_v52 = vadd.f32 %v1249_v49, %v1009_v47  ;;  %v2507_v47 = vor.u32 %v2586_v34, %v2504_v35 }
 0x6af   : > { %v1410_v55 = vmax.f32 %v1224_v46, 0.0  ;;  %v2515_v46 = vor.u32 %v2587_v38, %v2512_v39 }
 0x6b0   : > { %v1412_v57 = vmax.f32 %v1250_v52, 0.0 }
 0x6b1   : > { %v1426_v60 = vpack.c.bf16 %v1410_v55, %v1410_v55 }
 0x6b2   : > { %v1428_v62 = vpack.c.bf16 %v1412_v57, %v1412_v57  ;;  %v1210_v63 = vpop.f32.mrf.mxu3  ;;  %v2595_v57 = vld [vmem:[%s3269_s15 + $0xf4] sm:$0xf0] }
 0x6b3   : > { %v1211_v0 = vadd.f32 %v1210_v63, %v1006_v56  ;;  %v1236_v1 = vpop.f32.mrf.mxu2  ;;  %1655 = vmatmul.bf16.vlgmr.msra.gmra.mxu0 %v1426_v60  ;;  %v2510_v56 = vld [vmem:[%s3269_s15 + $0xb8] sm:$0xf]  ;;  %v2570_v60 = vld [vmem:[%s3269_s15 + $0x34] sm:$0xf] }
 0x6b4   : > { %v1237_v4 = vadd.f32 %v1236_v1, %v1008_v58  ;;  %1681 = vmatmul.bf16.vlgmr.msrb.gmra.mxu1 %v1428_v62  ;;  %v1225_v6 = vpop.f32.mrf.mxu0  ;;  %1757 = vmatpush.bf16.xpose.msra.mxu0 %v2491_v59  ;;  %v3527_v63 = vld [vmem:[%s3251_s23 + $0x8] sm:$0xff] }
 0x6b5   : > { %v1409_v9 = vmax.f32 %v1211_v0, 0.0  ;;  %v1251_v10 = vpop.f32.mrf.mxu1  ;;  %1783 = vmatpush.bf16.xpose.msrb.mxu1 %v2499_v61  ;;  %v2440_v61 = vld [vmem:[%s3269_s15 + $0x70] sm:$0xf0]  ;;  %v2503_v0 = vor.u32 %v2594_v54, %v2502_v53  ;;  %v2571_v1 = vld [vmem:[%s3269_s15 + $0x3c] sm:$0xf]  ;;  %v1015_v8 = vperm.slane %v3527_v63, 1 }
 0x6b6   : > { %v1411_v14 = vmax.f32 %v1237_v4, 0.0  ;;  %v2511_v4 = vor.u32 %v2595_v57, %v2510_v56  ;;  %v2443_v7 = vor.u32 %v2570_v60, %v2440_v61  ;;  %v1017_v11 = vperm.slane %v3527_v63, 3 }
 0x6b7   : > { %v1425_v19 = vpack.c.bf16 %v1409_v9, %v1409_v9  ;;  %v2451_v9 = vor.u32 %v2571_v1, %v2448_v2  ;;  %v1016_v27 = vperm.slane %v3527_v63, 2 }
 0x6b8   : > { %v1427_v20 = vpack.c.bf16 %v1411_v14, %v1411_v14  ;;  %v2438_v14 = vld [vmem:[%s3269_s15 + $0x30] sm:$0xf] }
 0x6b9   : > { %1642 = vmatmul.bf16.vlgmr.msra.gmra.mxu3 %v1425_v19  ;;  %v2579_v19 = vld [vmem:[%s3269_s15 + $0x74] sm:$0xf0] }
 0x6ba   : > { %1668 = vmatmul.bf16.vlgmr.msrb.gmra.mxu2 %v1427_v20  ;;  %v1212_v24 = vpop.f32.mrf.mxu3  ;;  %1744 = vmatpush.bf16.xpose.msra.mxu3 %v2487_v15  ;;  %v2578_v15 = vld [vmem:[%s3269_s15 + $0x6c] sm:$0xf0] }
 0x6bb   : > { %v1238_v26 = vpop.f32.mrf.mxu2  ;;  %1770 = vmatpush.bf16.xpose.msrb.mxu2 %v2495_v5  ;;  %v1014_v24 = vperm.slane %v3527_v63, 0 }
 0x6bc   : > { %v1275_v29 = vpop.f32.mrf.mxu0  ;;  %1758 = vmatpush.bf16.xpose.msra.mxu0 %v2427_v21 }
 0x6bd   : > { %v1276_v32 = vadd.f32 %v1275_v29, %v1011_v22  ;;  %v1301_v33 = vpop.f32.mrf.mxu1  ;;  %1784 = vmatpush.bf16.xpose.msrb.mxu1 %v2435_v23  ;;  %v2439_v22 = vor.u32 %v2578_v15, %v2438_v14 }
 0x6be   : > { %v1302_v36 = vadd.f32 %v1301_v33, %v1013_v25  ;;  %v2447_v25 = vor.u32 %v2579_v19, %v2446_v18 }
 0x6bf   : > { %v1414_v40 = vmax.f32 %v1276_v32, 0.0 }
 0x6c0   : > { %v1416_v43 = vmax.f32 %v1302_v36, 0.0 }
 0x6c1   : > { %v1430_v48 = vpack.c.bf16 %v1414_v40, %v1414_v40  ;;  %v1019_v40 = vperm.slane %v3527_v63, 5 }
 0x6c2   : > { %v1432_v49 = vpack.c.bf16 %v1416_v43, %v1416_v43  ;;  %v1262_v50 = vpop.f32.mrf.mxu3  ;;  %1745 = vmatpush.bf16.xpose.msra.mxu3 %v2423_v37 }
 0x6c3   : > { %v1263_v51 = vadd.f32 %v1262_v50, %v1010_v41  ;;  %v1288_v52 = vpop.f32.mrf.mxu2  ;;  %1707 = vmatmul.bf16.vlgmr.msrb.gmra.mxu0 %v1430_v48  ;;  %1771 = vmatpush.bf16.xpose.msrb.mxu2 %v2431_v42  ;;  %v1021_v42 = vperm.slane %v3527_v63, 7  ;;  %v1018_v50 = vperm.slane %v3527_v63, 4 }
 0x6c4   : > { %v1289_v44 = vadd.f32 %v1288_v52, %v1012_v45  ;;  %1733 = vmatmul.bf16.vlgmr.msra.gmra.mxu1 %v1432_v49  ;;  %v1277_v55 = vpop.f32.mrf.mxu0  ;;  %1809 = vmatpush.bf16.xpose.msrb.mxu0 %v2507_v47  ;;  %v1020_v52 = vperm.slane %v3527_v63, 6 }
 0x6c5   : > { %v1413_v58 = vmax.f32 %v1263_v51, 0.0  ;;  %v1303_v59 = vpop.f32.mrf.mxu1  ;;  %1835 = vmatpush.bf16.xpose.msra.mxu1 %v2515_v46 }
 0x6c6   : > { %v1415_v62 = vmax.f32 %v1289_v44, 0.0 }
 0x6c7   : > { %v1429_v16 = vpack.c.bf16 %v1413_v58, %v1413_v58 }
 0x6c8   : > { %v1431_v6 = vpack.c.bf16 %v1415_v62, %v1415_v62 }
 0x6c9   : > { %1694 = vmatmul.bf16.vlgmr.msrb.gmra.mxu3 %v1429_v16 }
 0x6ca   : > { %1720 = vmatmul.bf16.vlgmr.msra.gmra.mxu2 %v1431_v6  ;;  %v1264_v10 = vpop.f32.mrf.mxu3  ;;  %1796 = vmatpush.bf16.xpose.msrb.mxu3 %v2503_v0 }
 0x6cb   : > { %v1290_v12 = vpop.f32.mrf.mxu2  ;;  %1822 = vmatpush.bf16.xpose.msra.mxu2 %v2511_v4 }
 0x6cc   : > { %v1327_v17 = vpop.f32.mrf.mxu0  ;;  %1810 = vmatpush.bf16.xpose.msrb.mxu0 %v2443_v7 }
 0x6cd   : > { %v1328_v5 = vadd.f32 %v1327_v17, %v1015_v8  ;;  %v1353_v20 = vpop.f32.mrf.mxu1  ;;  %1836 = vmatpush.bf16.xpose.msra.mxu1 %v2451_v9  ;;  %v2707_v9 = vld [vmem:[%s3245_s12 + $0x6] ss:$0 sm:$0xff] }
 0x6ce   : > { %v1354_v21 = vadd.f32 %v1353_v20, %v1017_v11 }
 0x6cf   : > { %v1418_v23 = vmax.f32 %v1328_v5, 0.0 }
 0x6d0   : > { %v1420_v26 = vmax.f32 %v1354_v21, 0.0 }
 0x6d1   : > { %v1434_v28 = vpack.c.bf16 %v1418_v23, %v1418_v23 }
 0x6d2   : > { %v1436_v29 = vpack.c.bf16 %v1420_v26, %v1420_v26  ;;  %v1314_v30 = vpop.f32.mrf.mxu3  ;;  %1797 = vmatpush.bf16.xpose.msrb.mxu3 %v2439_v22 }
 0x6d3   : > { %v1315_v31 = vadd.f32 %v1314_v30, %v1014_v24  ;;  %v1340_v32 = vpop.f32.mrf.mxu2  ;;  %1759 = vmatmul.bf16.vlgmr.msra.gmra.mxu0 %v1434_v28  ;;  %1823 = vmatpush.bf16.xpose.msra.mxu2 %v2447_v25 }
 0x6d4   : > { %v1341_v33 = vadd.f32 %v1340_v32, %v1016_v27  ;;  %1785 = vmatmul.bf16.vlgmr.msrb.gmra.mxu1 %v1436_v29  ;;  %v1329_v34 = vpop.f32.mrf.mxu0 }
 0x6d5   : > { %v1417_v35 = vmax.f32 %v1315_v31, 0.0  ;;  %v1355_v36 = vpop.f32.mrf.mxu1 }
 0x6d6   : > { %v1419_v37 = vmax.f32 %v1341_v33, 0.0 }
 0x6d7   : > { %v1433_v38 = vpack.c.bf16 %v1417_v35, %v1417_v35 }
 0x6d8   : > { %v1435_v39 = vpack.c.bf16 %v1419_v37, %v1419_v37 }
 0x6d9   : > { %1746 = vmatmul.bf16.vlgmr.msra.gmra.mxu3 %v1433_v38 }
 0x6da   : > { %1772 = vmatmul.bf16.vlgmr.msrb.gmra.mxu2 %v1435_v39  ;;  %v1316_v41 = vpop.f32.mrf.mxu3 }
 0x6db   : > { %v1342_v43 = vpop.f32.mrf.mxu2 }
 0x6dc   : > { %v1379_v45 = vpop.f32.mrf.mxu0 }
 0x6dd   : > { %v1380_v47 = vadd.f32 %v1379_v45, %v1019_v40  ;;  %v1405_v48 = vpop.f32.mrf.mxu1 }
 0x6de   : > { %v1406_v46 = vadd.f32 %v1405_v48, %v1021_v42 }
 0x6df   : > { %v1422_v49 = vmax.f32 %v1380_v47, 0.0 }
 0x6e0   : > { %v1424_v51 = vmax.f32 %v1406_v46, 0.0 }
 0x6e1   : > { %v1438_v53 = vpack.c.bf16 %v1422_v49, %v1422_v49 }
 0x6e2   : > { %v1440_v54 = vpack.c.bf16 %v1424_v51, %v1424_v51  ;;  %v1366_v44 = vpop.f32.mrf.mxu3 }
 0x6e3   : > { %v1367_v55 = vadd.f32 %v1366_v44, %v1018_v50  ;;  %v1392_v56 = vpop.f32.mrf.mxu2  ;;  %1811 = vmatmul.bf16.vlgmr.msrb.gmra.mxu0 %v1438_v53 }
 0x6e4   : > { %v1393_v57 = vadd.f32 %v1392_v56, %v1020_v52  ;;  %1837 = vmatmul.bf16.vlgmr.msra.gmra.mxu1 %v1440_v54  ;;  %v1381_v58 = vpop.f32.mrf.mxu0 }
 0x6e5   : > { %v1421_v59 = vmax.f32 %v1367_v55, 0.0  ;;  %v1407_v60 = vpop.f32.mrf.mxu1 }
 0x6e6   : > { %v1423_v61 = vmax.f32 %v1393_v57, 0.0 }
 0x6e7   : > { %v1437_v62 = vpack.c.bf16 %v1421_v59, %v1421_v59 }
 0x6e8   : > { %v1439_v0 = vpack.c.bf16 %v1423_v61, %v1423_v61 }
 0x6e9   : > { %1798 = vmatmul.bf16.vlgmr.msrb.gmra.mxu3 %v1437_v62 }
 0x6ea   : > { %1824 = vmatmul.bf16.vlgmr.msra.gmra.mxu2 %v1439_v0  ;;  %v1368_v1 = vpop.f32.mrf.mxu3 }
 0x6eb   : > { %v1394_v2 = vpop.f32.mrf.mxu2 }
 0x730   : > { %v1656_v63 = vpop.f32.mrf.mxu0 }
 0x731   : > { %v1682_v16 = vpop.f32.mrf.mxu1 }
 0x738   : > { %v1658_v4 = vpop.f32.mrf.mxu0 }
 0x739   : > { %v1684_v6 = vpop.f32.mrf.mxu1  ;;  %v2708_v4 = vld [vmem:[%s3245_s12 + $0x4] ss:$0 sm:$0xff] }
 0x73c   : > { %v1643_v7 = vpop.f32.mrf.mxu3 }
 0x73d   : > { %v1669_v8 = vpop.f32.mrf.mxu2  ;;  %v1644_v12 = vadd.f32 %v2707_v9, %v1643_v7  ;;  %v2709_v7 = vld [vmem:[%s3245_s12 + $0x5] ss:$0 sm:$0xff] }
 0x73f   : > { %v1657_v17 = vadd.f32 %v1656_v63, %v1644_v12 }
 0x740   : > { %v1708_v10 = vpop.f32.mrf.mxu0 }
 0x741   : > { %v1734_v11 = vpop.f32.mrf.mxu1  ;;  %v1670_v5 = vadd.f32 %v1669_v8, %v1657_v17 }
 0x743   : > { %v1683_v22 = vadd.f32 %v1682_v16, %v1670_v5 }
 0x744   : > { %v1645_v14 = vpop.f32.mrf.mxu3 }
 0x745   : > { %v1671_v15 = vpop.f32.mrf.mxu2 }
 0x748   : > { %v1710_v18 = vpop.f32.mrf.mxu0 }
 0x749   : > { %v1736_v19 = vpop.f32.mrf.mxu1 }
 0x74c   : > { %v1695_v20 = vpop.f32.mrf.mxu3 }
 0x74d   : > { %v1721_v21 = vpop.f32.mrf.mxu2  ;;  %v1696_v24 = vadd.f32 %v1695_v20, %v1683_v22 }
 0x74f   : > { %v1709_v27 = vadd.f32 %v1708_v10, %v1696_v24 }
 0x750   : > { %v1760_v23 = vpop.f32.mrf.mxu0 }
 0x751   : > { %v1786_v25 = vpop.f32.mrf.mxu1  ;;  %v1722_v30 = vadd.f32 %v1721_v21, %v1709_v27 }
 0x753   : > { %v1735_v33 = vadd.f32 %v1734_v11, %v1722_v30 }
 0x754   : > { %v1697_v26 = vpop.f32.mrf.mxu3 }
 0x755   : > { %v1723_v28 = vpop.f32.mrf.mxu2 }
 0x758   : > { %v1762_v29 = vpop.f32.mrf.mxu0 }
 0x759   : > { %v1788_v31 = vpop.f32.mrf.mxu1 }
 0x75c   : > { %v1747_v32 = vpop.f32.mrf.mxu3 }
 0x75d   : > { %v1773_v34 = vpop.f32.mrf.mxu2  ;;  %v1748_v35 = vadd.f32 %v1747_v32, %v1735_v33 }
 0x75f   : > { %v1761_v38 = vadd.f32 %v1760_v23, %v1748_v35 }
 0x760   : > { %v1812_v36 = vpop.f32.mrf.mxu0 }
 0x761   : > { %v1838_v37 = vpop.f32.mrf.mxu1  ;;  %v1774_v41 = vadd.f32 %v1773_v34, %v1761_v38 }
 0x763   : > { %v1787_v45 = vadd.f32 %v1786_v25, %v1774_v41 }
 0x764   : > { %v1749_v39 = vpop.f32.mrf.mxu3 }
 0x765   : > { %v1775_v40 = vpop.f32.mrf.mxu2 }
 0x768   : > { %v1814_v42 = vpop.f32.mrf.mxu0 }
 0x769   : > { %v1840_v43 = vpop.f32.mrf.mxu1 }
 0x76c   : > { %v1799_v47 = vpop.f32.mrf.mxu3 }
 0x76d   : > { %v1800_v48 = vadd.f32 %v1799_v47, %v1787_v45  ;;  %v1825_v46 = vpop.f32.mrf.mxu2 }
 0x76f   : > { %v1813_v49 = vadd.f32 %v1812_v36, %v1800_v48 }
 0x771   : > { %v1826_v50 = vadd.f32 %v1825_v46, %v1813_v49 }
 0x773   : > { %v1839_v51 = vadd.f32 %v1838_v37, %v1826_v50 }
 0x774   : > { %v1801_v52 = vpop.f32.mrf.mxu3 }
 0x775   : > { %v1827_v53 = vpop.f32.mrf.mxu2  ;;  %v1842_v54 = vadd.f32 %v1839_v51, %v3392_v13 }
 0x777   : > { %v1843_v44 = vsel %vm557_vm1, %v1842_v54, 0.0 }
 0x778   : > { %1844 = vadd.xlane.f32.xlu0 %v1843_v44 }
 0x7eb   : > { %v1845_v55 = vpop.xlane.xlu0 %1844 }
 0x7ec   : > { %v1846_v56 = vmul.f32 %v1845_v55, %v3343_v3 }
 0x7ee   : > { %v1847_v57 = vsub.f32 %v1842_v54, %v1846_v56 }
 0x7f0   : > { %v1848_v58 = vmul.f32 %v1847_v57, %v1847_v57 }
 0x7f2   : > { %v1849_v59 = vsel %vm557_vm1, %v1848_v58, 0.0 }
 0x7f3   : > { %1850 = vadd.xlane.f32.xlu2 %v1849_v59 }
 0x866   : > { %v1851_v60 = vpop.xlane.xlu2 %1850 }
 0x867   : > { %v1852_v61 = vmul.f32 %v1851_v60, %v3343_v3 }
 0x869   : > { %v1853_v62 = vadd.f32 1e-05, %v1852_v61 }
 0x86b   : > { %2730 = vrsqrt.f32 %v1853_v62  ;;  %vm1860_vm12 = vweird.f32 %v1853_v62 }
 0x871   : > { %v2731_v0 = vpop.eup %2730 }
 0x872   : > { %v1855_v13 = vmul.f32 %v2731_v0, %v1853_v62  ;;  %vm1861_vm11 = vweird.f32 %v2731_v0 }
 0x873   : > { %vm1862_vm13 = vmor %vm1860_vm12, %vm1861_vm11 }
 0x874   : > { %v1856_v1 = vmul.f32 %v2731_v0, %v1855_v13 }
 0x876   : > { %v1857_v2 = vmul.f32 0.5, %v1856_v1 }
 0x878   : > { %v1858_v63 = vsub.f32 1.5, %v1857_v2 }
 0x87a   : > { %v1859_v16 = vmul.f32 %v2731_v0, %v1858_v63 }
 0x87c   : > { %v1863_v6 = vsel %vm1862_vm13, %v2731_v0, %v1859_v16 }
 0x87d   : > { %v1864_v8 = vmul.f32 %v1863_v6, %v1847_v57 }
 0x87f   : > { %v1866_v9 = vmul.f32 %v2708_v4, %v1864_v8  ;;  %1873 = sbr.rel (%p2516_p8) target bundleno = 3099 (0xc1b), region = 80 }
 0x881   : > { %v1868_v10 = vadd.f32 %v2709_v7, %v1866_v9 }
 0x883   : > { %1869 = vst.msk [vmem:[#allocation2] sm:$0xff] %vm557_vm1, %v1868_v10 }
 0x884   : > { %2517 = vmatpush.xpose.msk.msra.mxu0 %vm557_vm1, %v1868_v10  ;;  %v1875_v3 = vld [vmem:[#allocation4 + $0x3] sm:$0x1]  ;;  %v1874_v11 = vld [vmem:[%s3610_s0 + $0x9] sm:$0x1]  ;;  %v1876_v12 = vld [vmem:[#allocation4 + $0x8] sm:$0x1]  ;;  %v1936_v21 = vlaneseq }
 0x885   : > { %vm1903_vm14 = vcmp.gt.f32.partialorder %v1874_v11, 0.5  ;;  %vm1905_vm15 = vcmask 57344   ;;  %v1931_v17 = vld [vmem:[%s3610_s0 + $0xa] sm:$0x1]  ;;  %v3024_v32 = vmov 2   ;;  %v3025_v35 = vmov 0.0  }
 0x886   : > { %v1937_v22 = vand.u32 127, %v1936_v21  ;;  %2732 = vset.pattern.permute.xlu1 %v3024_v32  ;;  %2733 = vset.pattern.permute.xlu0 %v3024_v32  ;;  %v1947_v34 = vld [vmem:[%s3610_s0 + $0x8] sm:$0x1]  ;;  %v1952_v52 = vld [vmem:[%s3610_s0] sm:$0xf]  ;;  %vm1997_vm7 = vcmask 24576  }
 0x887   : > { %2518 = vmatmul.msk.f32.vlgmr.msra.gmra.mxu0 %vm557_vm1, %v1875_v3  ;;  %v1953_v54 = vld [vmem:[#allocation4 + $0x4] sm:$0x1]  ;;  %v2734_v55 = vld [vmem:[#allocation4 + $0x5] ss:$0 sm:$0xff]  ;;  %v2735_v59 = vld [vmem:[#allocation4 + $0x7] ss:$0 sm:$0xff] }
 0x888   : > { %v1938_v24 = vcvt.s32.f32 %v1937_v22  ;;  %v1955_v0 = vld [vmem:[#allocation4 + $0x6] sm:$0x1]  ;;  %v1957_v13 = vld [vmem:[#allocation4 + $0x9] sm:$0x1] }
 0x904   : > { %v1900_v14 = vpop.f32.mrf.mxu0 }
 0x905   : > { %v1901_v15 = vadd.f32 %v1900_v14, %v1876_v12 }
 0x907   : > { %v1904_v18 = vsel %vm1903_vm14, -inf, %v1901_v15 }
 0x908   : > { %v1906_v19 = vsel %vm1905_vm15, %v1904_v18, -inf  ;;  %v1932_v5 = vadd.f32 %v1931_v17, %v1904_v18 }
 0x909   : > { %1907 = vmax.xlane.f32.xlu2 %v1906_v19 }
 0x90a   : > { %v1933_v20 = vsel %vm1905_vm15, %v1932_v5, -inf }
 0x90b   : > { %1934 = vmax.xlane.f32.xlu0 %v1933_v20 }
 0x97c   : > { %v1908_v23 = vpop.xlane.xlu2 %1907 }
 0x97d   : > { %v1909_v25 = vsub.f32 %v1904_v18, %v1908_v23 }
 0x97e   : > { %v1935_v26 = vpop.xlane.xlu0 %1934 }
 0x97f   : > { %v1910_v27 = vmul.f32 1.442695, %v1909_v25  ;;  %vm1939_vm0 = vcmp.ge.f32.partialorder %v1932_v5, %v1935_v26 }
 0x980   : > { %v1940_v28 = vsel %vm1939_vm0, %v1938_v24, 8.0 }
 0x981   : > { %2736 = vpow2.f32 %v1910_v27  ;;  %v1941_v29 = vsel %vm1905_vm15, %v1940_v28, inf }
 0x982   : > { %1942 = vmin.xlane.f32.xlu0 %v1941_v29 }
 0x987   : > { %v2737_v30 = vpop.eup %2736 }
 0x988   : > { %v1912_v31 = vsel %vm1905_vm15, %v2737_v30, 0.0 }
 0x98a   : > { %1913 = vadd.xlane.f32.xlu0 %v1912_v31 }
 0x9f5   : > { %v1943_v33 = vpop.xlane.xlu0 %1942 }
 0x9f6   : > { %vm1944_vm3 = vcmp.eq.f32.partialorder %v1938_v24, %v1943_v33 }
 0x9f7   : > { %v2519_v36 = vsel %vm1944_vm3, 1.0, %v3025_v35 }
 0x9f8   : > { %v1948_v37 = vmul.f32 %v2519_v36, %v1947_v34 }
 0x9fa   : > { %v1949_v38 = vsel %vm1905_vm15, %v1948_v37, 0.0 }
 0x9fb   : > { %1950 = vadd.xlane.f32.xlu1 %v1949_v38 }
 0x9fd   : > { %v1914_v39 = vpop.xlane.xlu0 %1913 }
 0x9fe   : > { %2738 = vrcp.f32 %v1914_v39  ;;  %v1926_v43 = vand.u32 2147483648, %v1914_v39  ;;  %v1924_v47 = vand.u32 2147483647, %v1914_v39  ;;  %vm1920_vm5 = vweird.f32 %v1914_v39 }
 0xa00   : > { %v1927_v46 = vor.u32 1.1754944e-38, %v1926_v43  ;;  %vm1925_vm6 = vcmp.eq.f32.partialorder %v1924_v47, 8.507059e+37 }
 0xa04   : > { %v2739_v40 = vpop.eup %2738 }
 0xa05   : > { %v1916_v41 = vmul.f32 %v2739_v40, %v1914_v39  ;;  %vm1921_vm4 = vweird.f32 %v2739_v40 }
 0xa06   : > { %vm1922_vm2 = vmor %vm1920_vm5, %vm1921_vm4 }
 0xa07   : > { %v1917_v42 = vsub.f32 1.0, %v1916_v41 }
 0xa09   : > { %v1918_v45 = vmul.f32 %v2739_v40, %v1917_v42 }
 0xa0b   : > { %v1919_v48 = vadd.f32 %v2739_v40, %v1918_v45 }
 0xa0d   : > { %v1923_v49 = vsel %vm1922_vm2, %v2739_v40, %v1919_v48 }
 0xa0e   : > { %v1928_v50 = vsel %vm1925_vm6, %v1927_v46, %v1923_v49 }
 0xa0f   : > { %v1929_v51 = vmul.f32 %v2737_v30, %v1928_v50 }
 0xa11   : > { %1930 = vst.msk [vmem:[#allocation13] sm:$0x1] %vm1905_vm15, %v1929_v51 }
 0xa14   : > { %1961 = vperm.xlu1 %2732, %v1952_v52  }
 0xa6e   : > { %v1951_v53 = vpop.xlane.xlu1 %1950 }
 0xa6f   : > { %v1958_v44 = vmul.f32 %v1953_v54, %v1951_v53 }
 0xa71   : > { %v1966_v57 = vperm.slane %v1958_v44, 0 }
 0xa86   : > { %v1962_v56 = vpop.permute.xlu1 %1961 }
 0xa87   : > { %v1965_v58 = vmul.f32 %v2734_v55, %v1962_v56 }
 0xa89   : > { %v1967_v60 = vadd.f32 %v1966_v57, %v1965_v58 }
 0xa8b   : > { %v1969_v61 = vadd.f32 %v2735_v59, %v1967_v60 }
 0xa8d   : > { %v1970_v62 = vmax.f32 %v1969_v61, 0.0 }
 0xa8f   : > { %2520 = vmatpush.xpose.msk.msra.mxu1 %vm557_vm1, %v1970_v62 }
 0xa92   : > { %2521 = vmatmul.msk.f32.vlgmr.msra.gmra.mxu1 %vm557_vm1, %v1955_v0 }
 0xb0f   : > { %v1994_v1 = vpop.f32.mrf.mxu1 }
 0xb10   : > { %v1995_v2 = vadd.f32 %v1994_v1, %v1957_v13 }
 0xb12   : > { %v1998_v63 = vsel %vm1997_vm7, %v1995_v2, -inf }
 0xb13   : > { %1999 = vmax.xlane.f32.xlu2 %v1998_v63 }
 0xb86   : > { %v2000_v16 = vpop.xlane.xlu2 %1999 }
 0xb87   : > { %v2001_v4 = vsub.f32 %v1995_v2, %v2000_v16 }
 0xb89   : > { %v2002_v6 = vmul.f32 1.442695, %v2001_v4 }
 0xb8b   : > { %2740 = vpow2.f32 %v2002_v6 }
 0xb91   : > { %v2741_v7 = vpop.eup %2740 }
 0xb92   : > { %v2004_v8 = vsel %vm1997_vm7, %v2741_v7, 0.0 }
 0xb93   : > { %2005 = vadd.xlane.f32.xlu2 %v2004_v8 }
 0xc06   : > { %v2006_v9 = vpop.xlane.xlu2 %2005 }
 0xc07   : > { %2742 = vrcp.f32 %v2006_v9  ;;  %v2018_v12 = vand.u32 2147483648, %v2006_v9  ;;  %v2016_v15 = vand.u32 2147483647, %v2006_v9  ;;  %vm2012_vm8 = vweird.f32 %v2006_v9 }
 0xc09   : > { %v2019_v18 = vor.u32 1.1754944e-38, %v2018_v12  ;;  %vm2017_vm10 = vcmp.eq.f32.partialorder %v2016_v15, 8.507059e+37 }
 0xc0d   : > { %v2743_v10 = vpop.eup %2742 }
 0xc0e   : > { %v2008_v3 = vmul.f32 %v2743_v10, %v2006_v9  ;;  %vm2013_vm1 = vweird.f32 %v2743_v10 }
 0xc0f   : > { %vm2014_vm9 = vmor %vm2012_vm8, %vm2013_vm1 }
 0xc10   : > { %v2009_v11 = vsub.f32 1.0, %v2008_v3 }
 0xc12   : > { %v2010_v14 = vmul.f32 %v2743_v10, %v2009_v11 }
 0xc14   : > { %v2011_v17 = vadd.f32 %v2743_v10, %v2010_v14 }
 0xc16   : > { %v2015_v19 = vsel %vm2014_vm9, %v2743_v10, %v2011_v17 }
 0xc17   : > { %v2020_v5 = vsel %vm2017_vm10, %v2019_v18, %v2015_v19 }
 0xc18   : > { %v2021_v20 = vmul.f32 %v2741_v7, %v2020_v5 }
 0xc1a   : > { %2022 = vst.msk [vmem:[#allocation14] sm:$0x1] %vm1997_vm7, %v2021_v20 }
 0xc1b PF: > { %p2636_p11 = scmp.eq.s32.totalorder %s3174_s13, 1  ;;  %s3026_s21 = smov [#allocation13]  }
 0xc1c   : > { %s2029_s1 = sshll.u32 %s3026_s21, 4  ;;  %s2031_s29 = sshll.u32 %s3618_s8, 4  ;;  %s2030_s1 = int_to_ptr.vmem [resolvable:$true] %s2029_s1  ;;  %s2032_s29 = int_to_ptr.hbm [resolvable:$true] %s2031_s29 }
 0xc1d   : > { %2609 = dma.vmem_to_hbm [thread:$0]  (%p2636_p11), %s2030_s1, 16, %s2032_s29, [#allocation6]  }
 0xc1e   : > { %s3642_s17 = sld [smem:[#allocation27_spill]]  ;;  %s3027_s11 = smov [#allocation14]  }
 0xc1f   : > { %s2041_s24 = sshll.u32 %s3027_s11, 4  ;;  %s2042_s24 = int_to_ptr.vmem [resolvable:$true] %s2041_s24 }
 0xc24   : > { %s2043_s26 = sshll.u32 %s3642_s17, 4  ;;  %s2044_s26 = int_to_ptr.hbm [resolvable:$true] %s2043_s26 }
 0xc25   : > { %2611 = dma.vmem_to_hbm [thread:$0]  (%p2636_p11), %s2042_s24, 16, %s2044_s26, [#allocation15]  }
 0xc26   : > { %2979 = dma.done.wait (%p2636_p11), [#allocation6], 16  }
 0xc27   : > { %2981 = vsyncadd (%p2636_p11), [#allocation6], 4294967280 }
 0xc28   : > { %2983 = dma.done.wait (%p2636_p11), [#allocation15], 16  }
 0xc29   : > { %2985 = vsyncadd (%p2636_p11), [#allocation15], 4294967280 }
 0xc2a PF: > { %s3643_s12 = sld [smem:[#allocation22_spill]]  ;;  %s3646_s30 = smov %s2992_s10 }
 0xc2b   : > { %s3644_s2 = sld [smem:[#allocation21_spill]] }
 0xc2c   : > { %s3645_s11 = sld [smem:[#allocation23_spill]] }
 0xc30   : > { %p26_p0 = scmp.ge.s32.totalorder %s3643_s12, 4  }
 0xc31   : > { %s3647_s10 = smov %s3644_s2 }
 0xc32   :  { %28 = sbr.rel (!%p26_p0) target bundleno = 13 (0xd), region = 151 }
 0xc37   :  { %2062 = vsyncpa [#allocation5], 1 }
 0xc38   :  { %2064 = vsyncpa [#allocation5 + $0x1], 1 }
 0xc39   :  { %2065 = vsyncpa [#allocation8], 1 }
 0xc3a   :  { %2067 = vsyncpa [#allocation8 + $0x1], 1 }
 0xc3b   :  { %2068 = vsyncpa [#allocation11], 1 }
 0xc3c   :  { %2070 = vsyncpa [#allocation11 + $0x1], 1 }
 0xc3d   :  { %2071 = vsyncpa [#allocation6], 1 }
 0xc3e   :  { %2073 = vsyncpa [#allocation6 + $0x1], 1 }
 0xc3f   :  { %2074 = vsyncpa [#allocation15], 1 }

</bundles_post_ra>
